<compile_context>
chip_gen: v6e
topology: v6e:2x2x1
jax: 0.10.0
libtpu: 0.0.40
codegen_flags: <defaults>
</compile_context>

<pallas_src>
import jax
import jax.numpy as jnp
from jax.experimental import pallas as pl
from jax.experimental.pallas import tpu as pltpu

EPS = 1e-5  # nn.LayerNorm default eps


# ----------------------------------------------------------------------------
# Fused TCN kernel: all TemporalBlocks, one batch group (Bt samples) per step
# ----------------------------------------------------------------------------
def make_tcn_kernel(blocks, L, Bt):
    LB = L * Bt
    n_par = sum(6 if b["has_ds"] else 4 for b in blocks)

    def kernel(*refs):
        x_ref = refs[0]
        params = refs[1:1 + n_par]
        o_ref = refs[1 + n_par]
        act_ref = refs[2 + n_par]          # resident activation scratch (Cmax, LB)
        f32 = jnp.float32

        # ---- in-kernel constants (cheap iota/compare; no HBM inputs) ----
        # merged column index = t*Bt + b  (time-major, batch-minor)
        lane = jax.lax.broadcasted_iota(jnp.int32, (1, LB), 1)
        col_mod = jax.lax.broadcasted_iota(jnp.int32, (LB, Bt), 0) & (Bt - 1)
        sel = (col_mod ==
               jax.lax.broadcasted_iota(jnp.int32, (LB, Bt), 1)).astype(f32)
        col_mod_t = jax.lax.broadcasted_iota(jnp.int32, (Bt, LB), 1) & (Bt - 1)
        sel_t = (jax.lax.broadcasted_iota(jnp.int32, (Bt, LB), 0) ==
                 col_mod_t).astype(f32)
        row2_lb = jax.lax.broadcasted_iota(jnp.int32, (2, LB), 0)
        row2_bt = jax.lax.broadcasted_iota(jnp.int32, (2, Bt), 0)

        def causal_conv(src, w_ref, b_ref, cin, K, dilation):
            # Build the im2col operand from K rolled/masked taps (no scratch,
            # no unaligned stores); one lane-dense MXU matmul per conv.
            taps = []
            for j in range(K):
                q = (K - 1 - j) * dilation          # causal left shift (time)
                if q == 0:
                    taps.append(src)
                elif q >= L:                        # deep-dilation guard
                    taps.append(jnp.zeros((cin, LB), f32))
                else:
                    rolled = pltpu.roll(src, shift=q * Bt, axis=1)   # XLU rotate
                    taps.append(jnp.where(lane < q * Bt, 0.0, rolled))
            slab = taps[0] if K == 1 else jnp.concatenate(taps, axis=0)
            return jnp.dot(w_ref[...], slab,
                           preferred_element_type=f32) + b_ref[...]

        def layernorm_relu(h, cout):
            # Per-sample stats over (cout, L); 2 stacked selector matmuls.
            inv_n = 1.0 / float(cout * L)
            csum = jnp.sum(h, axis=0, keepdims=True)            # (1, LB)
            csq = jnp.sum(h * h, axis=0, keepdims=True)         # (1, LB)
            stats = jnp.where(row2_lb == 0, csum, csq)          # (2, LB)
            red = jnp.dot(stats, sel, preferred_element_type=f32) * inv_n  # (2, Bt)
            mu = red[0:1, :]
            var = jnp.maximum(red[1:2, :] - mu * mu, 0.0)       # clamped one-pass
            isd = jax.lax.rsqrt(var + EPS)
            ab = jnp.where(row2_bt == 0, isd, -mu * isd)        # (2, Bt)
            ab_cols = jnp.dot(ab, sel_t, preferred_element_type=f32)       # (2, LB)
            return jnp.maximum(h * ab_cols[0:1, :] + ab_cols[1:2, :], 0.0)

        # stage the group's input into the activation scratch once
        act_ref[pl.ds(0, blocks[0]["cin"]), :] = x_ref[0]

        p = 0
        out = None
        for blk in blocks:                       # statically unrolled fusion
            cin, cout, K, d = blk["cin"], blk["cout"], blk["K"], blk["dilation"]
            w1_ref, b1_ref, w2_ref, b2_ref = params[p:p + 4]
            p += 4
            if blk["has_ds"]:
                wd_ref, bd_ref = params[p:p + 2]
                p += 2
            h = layernorm_relu(
                causal_conv(act_ref[pl.ds(0, cin), :], w1_ref, b1_ref, cin, K, d),
                cout)
            h = layernorm_relu(
                causal_conv(h, w2_ref, b2_ref, cout, K, d), cout)
            if blk["has_ds"]:
                res = jnp.dot(wd_ref[...], act_ref[pl.ds(0, cin), :],
                              preferred_element_type=f32) + bd_ref[...]
            else:
                res = act_ref[pl.ds(0, cin), :]       # identity skip (cin == cout)
            out = jnp.maximum(h + res, 0.0)
            act_ref[pl.ds(0, cout), :] = out          # stays in VMEM for next block

        o_ref[0] = out                                # lane-dense (Cout, LB) store

    return kernel


# ----------------------------------------------------------------------------
# Wrapper: one fused pallas_call over batch groups
# ----------------------------------------------------------------------------
def tcn_forward_pallas(x, params, dilations, batch_tile):
    B, C0, L = x.shape
    Bt = batch_tile
    assert B % Bt == 0, "batch_tile must divide batch"
    assert Bt & (Bt - 1) == 0, "batch_tile must be a power of two"
    LB = L * Bt
    nG = B // Bt

    blocks, args, in_specs = [], [], [pl.BlockSpec((1, C0, LB), lambda g: (g, 0, 0))]
    cin = C0
    for (w1, b1, w2, b2, wd, bd), d in zip(params, dilations):
        cout, _, K = w1.shape
        # fold taps into one im2col weight: Wf[o, j*cin + c] = w[o, c, j]
        w1f = jnp.transpose(w1, (0, 2, 1)).reshape(cout, K * cin)
        w2f = jnp.transpose(w2, (0, 2, 1)).reshape(cout, K * cout)
        args += [w1f, b1.reshape(cout, 1), w2f, b2.reshape(cout, 1)]
        in_specs += [pl.BlockSpec((cout, K * cin), lambda g: (0, 0)),
                     pl.BlockSpec((cout, 1), lambda g: (0, 0)),
                     pl.BlockSpec((cout, K * cout), lambda g: (0, 0)),
                     pl.BlockSpec((cout, 1), lambda g: (0, 0))]
        has_ds = wd is not None
        if has_ds:
            args += [wd, bd.reshape(cout, 1)]
            in_specs += [pl.BlockSpec((cout, cin), lambda g: (0, 0)),
                         pl.BlockSpec((cout, 1), lambda g: (0, 0))]
        blocks.append(dict(cin=cin, cout=cout, K=K, dilation=d, has_ds=has_ds))
        cin = cout

    Cmax = max([C0] + [b["cout"] for b in blocks])
    Clast = blocks[-1]["cout"]
    x_tiled = to_tiled(x, Bt)
    kernel = make_tcn_kernel(blocks, L, Bt)

    y_tiled = pl.pallas_call(
        kernel,
        out_shape=jax.ShapeDtypeStruct((nG, Clast, LB), jnp.float32),
        grid_spec=pltpu.PrefetchScalarGridSpec(
            num_scalar_prefetch=0,
            grid=(nG,),
            in_specs=in_specs,
            out_specs=pl.BlockSpec((1, Clast, LB), lambda g: (g, 0, 0)),
            scratch_shapes=[pltpu.VMEM((Cmax, LB), jnp.float32)],  # activations
        ),
        compiler_params=pltpu.CompilerParams(
            dimension_semantics=("parallel",)),      # groups shard over v7x's 2 TCs
    )(x_tiled, *args)
    return from_tiled(y_tiled, L)


# ----------------------------------------------------------------------------
# Layout glue: (B, C, L)  <->  (nG, C, L*Bt) time-major/batch-minor tiles
# ----------------------------------------------------------------------------
def to_tiled(x, Bt):
    B, C, L = x.shape
    nG = B // Bt
    xt = jnp.transpose(x, (1, 2, 0)).reshape(C, L, nG, Bt)   # [c, t, g, b]
    return jnp.transpose(xt, (2, 0, 1, 3)).reshape(nG, C, L * Bt)


def from_tiled(y, L):
    nG, C, LB = y.shape
    Bt = LB // L
    yt = y.reshape(nG, C, L, Bt)
    yt = jnp.transpose(yt, (1, 2, 0, 3)).reshape(C, L, nG * Bt)
    return jnp.transpose(yt, (2, 0, 1))


# ----------------------------------------------------------------------------
# Deterministic synthetic parameter init (mirrors TemporalBlock.__init__ shapes)
# ----------------------------------------------------------------------------
def weight_norm_weight(v, g):
    # PyTorch weight_norm default (dim=0): per-output-channel norm over (Cin, K)
    nrm = jnp.sqrt(jnp.sum(v * v, axis=(1, 2), keepdims=True))
    return g * v / nrm


def init_params(key, num_inputs, num_channels, K):
    params, dilations = [], []
    cin = num_inputs
    for i, cout in enumerate(num_channels):
        d = 2 ** i
        key, k0, k1, k2, k3, k4, k5 = jax.random.split(key, 7)
        w1v = 0.01 * jax.random.normal(k0, (cout, cin, K), jnp.float32)
        w1 = weight_norm_weight(w1v, jnp.ones((cout, 1, 1), jnp.float32))
        b1 = 0.1 * jax.random.normal(k1, (cout,), jnp.float32)
        w2v = 0.01 * jax.random.normal(k2, (cout, cout, K), jnp.float32)
        w2 = weight_norm_weight(w2v, jnp.ones((cout, 1, 1), jnp.float32))
        b2 = 0.1 * jax.random.normal(k3, (cout,), jnp.float32)
        if cin != cout:
            wd = 0.01 * jax.random.normal(k4, (cout, cin), jnp.float32)
            bd = 0.1 * jax.random.normal(k5, (cout,), jnp.float32)
        else:
            wd, bd = None, None          # downsample is None in PyTorch -> res = x
        params.append((w1, b1, w2, b2, wd, bd))
        dilations.append(d)
        cin = cout
    return params, dilations


# ----------------------------------------------------------------------------
# Pure-JAX reference (validation only)
# ----------------------------------------------------------------------------
def ref_tcn(x, params, dilations):
    hp = jax.lax.Precision.HIGHEST

    def causal_conv(x, w, b, d):
        B, Cin, L = x.shape
        K = w.shape[-1]
        p = (K - 1) * d
        xp = jnp.pad(x, ((0, 0), (0, 0), (p, 0)))
        out = jnp.zeros((B, w.shape[0], L), jnp.float32) + b[None, :, None]
        for j in range(K):
            out = out + jnp.einsum('oc,bcl->bol', w[:, :, j],
                                   xp[:, :, j * d:j * d + L], precision=hp)
        return out

    def layernorm(h):
        mu = jnp.mean(h, axis=(1, 2), keepdims=True)
        var = jnp.mean((h - mu) ** 2, axis=(1, 2), keepdims=True)
        return (h - mu) / jnp.sqrt(var + EPS)

    for (w1, b1, w2, b2, wd, bd), d in zip(params, dilations):
        h = jax.nn.relu(layernorm(causal_conv(x, w1, b1, d)))
        h = jax.nn.relu(layernorm(causal_conv(h, w2, b2, d)))
        if wd is None:
            res = x
        else:
            res = jnp.einsum('oc,bcl->bol', wd, x, precision=hp) + bd[None, :, None]
        x = jax.nn.relu(h + res)
    return x


if __name__ == "__main__":
    key = jax.random.PRNGKey(0)

    B = 32                  # batch
    L = 32                  # sequence length (== batch, required by LayerNorm((C_out, batch)))
    Bt = 4                  # samples per grid step -> lane width L*Bt = 128, grid = 8
    num_inputs = 8
    num_channels = (16, 16)  # block 0 has a real downsample (8->16), block 1 identity
    kernel_size = 2

    key, kx = jax.random.split(key)
    x = jax.random.normal(kx, (B, num_inputs, L), jnp.float32)
    params, dilations = init_params(key, num_inputs, num_channels, kernel_size)

    out = jax.block_until_ready(tcn_forward_pallas(x, params, dilations, Bt))
    ref = jax.block_until_ready(ref_tcn(x, params, dilations))

    assert out.shape == (B, num_channels[-1], L), out.shape
    assert jnp.allclose(out, ref, atol=1e-3, rtol=1e-3), \
        float(jnp.max(jnp.abs(out - ref)))

    print("KERNEL_OK")
</pallas_src>

<mosaic_0001>
module attributes {stable_mosaic.version = 11 : i64} {
  func.func @kernel(%arg0: i32, %arg1: memref<1x8x128xf32, #tpu.memory_space<vmem>>, %arg2: memref<16x16xf32, #tpu.memory_space<vmem>>, %arg3: memref<16x1xf32, #tpu.memory_space<vmem>>, %arg4: memref<16x32xf32, #tpu.memory_space<vmem>>, %arg5: memref<16x1xf32, #tpu.memory_space<vmem>>, %arg6: memref<16x8xf32, #tpu.memory_space<vmem>>, %arg7: memref<16x1xf32, #tpu.memory_space<vmem>>, %arg8: memref<16x32xf32, #tpu.memory_space<vmem>>, %arg9: memref<16x1xf32, #tpu.memory_space<vmem>>, %arg10: memref<16x32xf32, #tpu.memory_space<vmem>>, %arg11: memref<16x1xf32, #tpu.memory_space<vmem>>, %arg12: memref<1x16x128xf32, #tpu.memory_space<vmem>>, %arg13: memref<16x128xf32, #tpu.memory_space<vmem>>) attributes {dimension_semantics = [#tpu.dimension_semantics<parallel>], iteration_bounds = array<i64: 8>, scalar_prefetch = 0 : i64, scratch_operands = 1 : i64, tpu.core_type = #tpu.core_type<tc>, window_params = [{transform_indices = @transform_0, window_bounds = array<i64: 1, 8, 128>}, {pipeline_mode = #tpu.pipeline_mode<synchronous>, transform_indices = @transform_1, window_bounds = array<i64: 16, 16>}, {pipeline_mode = #tpu.pipeline_mode<synchronous>, transform_indices = @transform_2, window_bounds = array<i64: 16, 1>}, {pipeline_mode = #tpu.pipeline_mode<synchronous>, transform_indices = @transform_3, window_bounds = array<i64: 16, 32>}, {pipeline_mode = #tpu.pipeline_mode<synchronous>, transform_indices = @transform_4, window_bounds = array<i64: 16, 1>}, {pipeline_mode = #tpu.pipeline_mode<synchronous>, transform_indices = @transform_5, window_bounds = array<i64: 16, 8>}, {pipeline_mode = #tpu.pipeline_mode<synchronous>, transform_indices = @transform_6, window_bounds = array<i64: 16, 1>}, {pipeline_mode = #tpu.pipeline_mode<synchronous>, transform_indices = @transform_7, window_bounds = array<i64: 16, 32>}, {pipeline_mode = #tpu.pipeline_mode<synchronous>, transform_indices = @transform_8, window_bounds = array<i64: 16, 1>}, {pipeline_mode = #tpu.pipeline_mode<synchronous>, transform_indices = @transform_9, window_bounds = array<i64: 16, 32>}, {pipeline_mode = #tpu.pipeline_mode<synchronous>, transform_indices = @transform_10, window_bounds = array<i64: 16, 1>}, {transform_indices = @transform_11, window_bounds = array<i64: 1, 16, 128>}]} {
    %0 = tpu.iota {dimensions = array<i32: 1>} : vector<1x128xi32>
    %1 = tpu.iota {dimensions = array<i32: 0>} : vector<128x4xi32>
    %c3_i32 = arith.constant 3 : i32
    %2 = vector.broadcast %c3_i32 : i32 to vector<128x4xi32>
    %3 = arith.andi %1, %2 : vector<128x4xi32>
    %4 = tpu.iota {dimensions = array<i32: 1>} : vector<128x4xi32>
    %5 = arith.cmpi eq, %3, %4 : vector<128x4xi32>
    %6 = arith.extui %5 : vector<128x4xi1> to vector<128x4xi32>
    %7 = arith.sitofp %6 : vector<128x4xi32> to vector<128x4xf32>
    %8 = tpu.iota {dimensions = array<i32: 1>} : vector<4x128xi32>
    %c3_i32_0 = arith.constant 3 : i32
    %9 = vector.broadcast %c3_i32_0 : i32 to vector<4x128xi32>
    %10 = arith.andi %8, %9 : vector<4x128xi32>
    %11 = tpu.iota {dimensions = array<i32: 0>} : vector<4x128xi32>
    %12 = arith.cmpi eq, %11, %10 : vector<4x128xi32>
    %13 = arith.extui %12 : vector<4x128xi1> to vector<4x128xi32>
    %14 = arith.sitofp %13 : vector<4x128xi32> to vector<4x128xf32>
    %15 = tpu.iota {dimensions = array<i32: 0>} : vector<2x128xi32>
    %16 = tpu.iota {dimensions = array<i32: 0>} : vector<2x4xi32>
    %c0 = arith.constant 0 : index
    %c0_1 = arith.constant 0 : index
    %c0_2 = arith.constant 0 : index
    %17 = vector.load %arg1[%c0, %c0_1, %c0_2] : memref<1x8x128xf32, #tpu.memory_space<vmem>>, vector<1x8x128xf32>
    %18 = vector.shape_cast %17 : vector<1x8x128xf32> to vector<8x128xf32>
    %c0_3 = arith.constant 0 : index
    %c0_4 = arith.constant 0 : index
    %19 = vector.load %arg13[%c0_3, %c0_4] : memref<16x128xf32, #tpu.memory_space<vmem>>, vector<8x128xf32>
    tpu.vector_store %arg13[%c0_3, %c0_4], %18 {strides = array<i32>} : memref<16x128xf32, #tpu.memory_space<vmem>>, vector<8x128xf32>,
    %c0_5 = arith.constant 0 : index
    %c0_6 = arith.constant 0 : index
    %20 = vector.load %arg13[%c0_5, %c0_6] : memref<16x128xf32, #tpu.memory_space<vmem>>, vector<8x128xf32>
    %c4_i32 = arith.constant 4 : i32
    %21 = tpu.dynamic_rotate %20 by %c4_i32 dim 1 : vector<8x128xf32>, i32 -> vector<8x128xf32>
    %c4_i32_7 = arith.constant 4 : i32
    %22 = vector.broadcast %c4_i32_7 : i32 to vector<1x128xi32>
    %23 = arith.cmpi slt, %0, %22 : vector<1x128xi32>
    %cst = arith.constant 0.000000e+00 : f32
    %24 = vector.shape_cast %23 : vector<1x128xi1> to vector<1x128xi1>
    %25 = vector.broadcast %24 : vector<1x128xi1> to vector<8x128xi1>
    %26 = vector.broadcast %cst : f32 to vector<8x128xf32>
    %27 = arith.select %25, %26, %21 : vector<8x128xi1>, vector<8x128xf32>
    %28 = tpu.concatenate %27, %20 in 0 : vector<8x128xf32>, vector<8x128xf32> -> vector<16x128xf32>
    %c0_8 = arith.constant 0 : index
    %c0_9 = arith.constant 0 : index
    %29 = vector.load %arg2[%c0_8, %c0_9] : memref<16x16xf32, #tpu.memory_space<vmem>>, vector<16x16xf32>
    %cst_10 = arith.constant dense<0.000000e+00> : vector<16x128xf32>
    %30 = tpu.matmul %29, %28, %cst_10 {dimension_numbers = #tpu.dot_dimension_numbers<[1], [0], [0], [1], [0, 0, 1, 1], [], []>} : vector<16x16xf32>, vector<16x128xf32>, vector<16x128xf32> -> vector<16x128xf32>
    %c0_11 = arith.constant 0 : index
    %c0_12 = arith.constant 0 : index
    %31 = vector.load %arg3[%c0_11, %c0_12] : memref<16x1xf32, #tpu.memory_space<vmem>>, vector<16x1xf32>
    %32 = vector.broadcast %31 : vector<16x1xf32> to vector<16x128xf32>
    %33 = arith.addf %30, %32 : vector<16x128xf32>
    %cst_13 = arith.constant dense<0.000000e+00> : vector<128xf32>
    %34 = vector.multi_reduction <add>, %33, %cst_13 [0] : vector<16x128xf32> to vector<128xf32>
    %35 = vector.shape_cast %34 : vector<128xf32> to vector<1x128xf32>
    %36 = arith.mulf %33, %33 : vector<16x128xf32>
    %cst_14 = arith.constant dense<0.000000e+00> : vector<128xf32>
    %37 = vector.multi_reduction <add>, %36, %cst_14 [0] : vector<16x128xf32> to vector<128xf32>
    %38 = vector.shape_cast %37 : vector<128xf32> to vector<1x128xf32>
    %c0_i32 = arith.constant 0 : i32
    %39 = vector.broadcast %c0_i32 : i32 to vector<2x128xi32>
    %40 = arith.cmpi eq, %15, %39 : vector<2x128xi32>
    %41 = vector.shape_cast %35 : vector<1x128xf32> to vector<1x128xf32>
    %42 = vector.broadcast %41 : vector<1x128xf32> to vector<2x128xf32>
    %43 = vector.shape_cast %38 : vector<1x128xf32> to vector<1x128xf32>
    %44 = vector.broadcast %43 : vector<1x128xf32> to vector<2x128xf32>
    %45 = arith.select %40, %42, %44 : vector<2x128xi1>, vector<2x128xf32>
    %cst_15 = arith.constant dense<0.000000e+00> : vector<2x4xf32>
    %46 = tpu.matmul %45, %7, %cst_15 {dimension_numbers = #tpu.dot_dimension_numbers<[1], [0], [0], [1], [0, 0, 1, 1], [], []>} : vector<2x128xf32>, vector<128x4xf32>, vector<2x4xf32> -> vector<2x4xf32>
    %cst_16 = arith.constant 0.001953125 : f32
    %47 = vector.broadcast %cst_16 : f32 to vector<2x4xf32>
    %48 = arith.mulf %46, %47 : vector<2x4xf32>
    %49 = vector.extract_strided_slice %48 {offsets = [0, 0], sizes = [1, 4], strides = [1, 1]} : vector<2x4xf32> to vector<1x4xf32>
    %50 = vector.extract_strided_slice %48 {offsets = [1, 0], sizes = [1, 4], strides = [1, 1]} : vector<2x4xf32> to vector<1x4xf32>
    %51 = arith.mulf %49, %49 : vector<1x4xf32>
    %52 = arith.subf %50, %51 : vector<1x4xf32>
    %cst_17 = arith.constant 0.000000e+00 : f32
    %53 = vector.broadcast %cst_17 : f32 to vector<1x4xf32>
    %54 = arith.maximumf %52, %53 : vector<1x4xf32>
    %cst_18 = arith.constant 9.99999974E-6 : f32
    %55 = vector.broadcast %cst_18 : f32 to vector<1x4xf32>
    %56 = arith.addf %54, %55 : vector<1x4xf32>
    %57 = math.rsqrt %56 : vector<1x4xf32>
    %c0_i32_19 = arith.constant 0 : i32
    %58 = vector.broadcast %c0_i32_19 : i32 to vector<2x4xi32>
    %59 = arith.cmpi eq, %16, %58 : vector<2x4xi32>
    %cst_20 = arith.constant 0.000000e+00 : f32
    %60 = vector.broadcast %cst_20 : f32 to vector<1x4xf32>
    %61 = arith.subf %60, %49 : vector<1x4xf32>
    %62 = arith.mulf %61, %57 : vector<1x4xf32>
    %63 = vector.shape_cast %57 : vector<1x4xf32> to vector<1x4xf32>
    %64 = vector.broadcast %63 : vector<1x4xf32> to vector<2x4xf32>
    %65 = vector.shape_cast %62 : vector<1x4xf32> to vector<1x4xf32>
    %66 = vector.broadcast %65 : vector<1x4xf32> to vector<2x4xf32>
    %67 = arith.select %59, %64, %66 : vector<2x4xi1>, vector<2x4xf32>
    %cst_21 = arith.constant dense<0.000000e+00> : vector<2x128xf32>
    %68 = tpu.matmul %67, %14, %cst_21 {dimension_numbers = #tpu.dot_dimension_numbers<[1], [0], [0], [1], [0, 0, 1, 1], [], []>} : vector<2x4xf32>, vector<4x128xf32>, vector<2x128xf32> -> vector<2x128xf32>
    %69 = vector.extract_strided_slice %68 {offsets = [0, 0], sizes = [1, 128], strides = [1, 1]} : vector<2x128xf32> to vector<1x128xf32>
    %70 = vector.broadcast %69 : vector<1x128xf32> to vector<16x128xf32>
    %71 = arith.mulf %33, %70 : vector<16x128xf32>
    %72 = vector.extract_strided_slice %68 {offsets = [1, 0], sizes = [1, 128], strides = [1, 1]} : vector<2x128xf32> to vector<1x128xf32>
    %73 = vector.broadcast %72 : vector<1x128xf32> to vector<16x128xf32>
    %74 = arith.addf %71, %73 : vector<16x128xf32>
    %cst_22 = arith.constant 0.000000e+00 : f32
    %75 = vector.broadcast %cst_22 : f32 to vector<16x128xf32>
    %76 = arith.maximumf %74, %75 : vector<16x128xf32>
    %c4_i32_23 = arith.constant 4 : i32
    %77 = tpu.dynamic_rotate %76 by %c4_i32_23 dim 1 : vector<16x128xf32>, i32 -> vector<16x128xf32>
    %c4_i32_24 = arith.constant 4 : i32
    %78 = vector.broadcast %c4_i32_24 : i32 to vector<1x128xi32>
    %79 = arith.cmpi slt, %0, %78 : vector<1x128xi32>
    %cst_25 = arith.constant 0.000000e+00 : f32
    %80 = vector.shape_cast %79 : vector<1x128xi1> to vector<1x128xi1>
    %81 = vector.broadcast %80 : vector<1x128xi1> to vector<16x128xi1>
    %82 = vector.broadcast %cst_25 : f32 to vector<16x128xf32>
    %83 = arith.select %81, %82, %77 : vector<16x128xi1>, vector<16x128xf32>
    %84 = tpu.concatenate %83, %76 in 0 : vector<16x128xf32>, vector<16x128xf32> -> vector<32x128xf32>
    %c0_26 = arith.constant 0 : index
    %c0_27 = arith.constant 0 : index
    %85 = vector.load %arg4[%c0_26, %c0_27] : memref<16x32xf32, #tpu.memory_space<vmem>>, vector<16x32xf32>
    %cst_28 = arith.constant dense<0.000000e+00> : vector<16x128xf32>
    %86 = tpu.matmul %85, %84, %cst_28 {dimension_numbers = #tpu.dot_dimension_numbers<[1], [0], [0], [1], [0, 0, 1, 1], [], []>} : vector<16x32xf32>, vector<32x128xf32>, vector<16x128xf32> -> vector<16x128xf32>
    %c0_29 = arith.constant 0 : index
    %c0_30 = arith.constant 0 : index
    %87 = vector.load %arg5[%c0_29, %c0_30] : memref<16x1xf32, #tpu.memory_space<vmem>>, vector<16x1xf32>
    %88 = vector.broadcast %87 : vector<16x1xf32> to vector<16x128xf32>
    %89 = arith.addf %86, %88 : vector<16x128xf32>
    %cst_31 = arith.constant dense<0.000000e+00> : vector<128xf32>
    %90 = vector.multi_reduction <add>, %89, %cst_31 [0] : vector<16x128xf32> to vector<128xf32>
    %91 = vector.shape_cast %90 : vector<128xf32> to vector<1x128xf32>
    %92 = arith.mulf %89, %89 : vector<16x128xf32>
    %cst_32 = arith.constant dense<0.000000e+00> : vector<128xf32>
    %93 = vector.multi_reduction <add>, %92, %cst_32 [0] : vector<16x128xf32> to vector<128xf32>
    %94 = vector.shape_cast %93 : vector<128xf32> to vector<1x128xf32>
    %c0_i32_33 = arith.constant 0 : i32
    %95 = vector.broadcast %c0_i32_33 : i32 to vector<2x128xi32>
    %96 = arith.cmpi eq, %15, %95 : vector<2x128xi32>
    %97 = vector.shape_cast %91 : vector<1x128xf32> to vector<1x128xf32>
    %98 = vector.broadcast %97 : vector<1x128xf32> to vector<2x128xf32>
    %99 = vector.shape_cast %94 : vector<1x128xf32> to vector<1x128xf32>
    %100 = vector.broadcast %99 : vector<1x128xf32> to vector<2x128xf32>
    %101 = arith.select %96, %98, %100 : vector<2x128xi1>, vector<2x128xf32>
    %cst_34 = arith.constant dense<0.000000e+00> : vector<2x4xf32>
    %102 = tpu.matmul %101, %7, %cst_34 {dimension_numbers = #tpu.dot_dimension_numbers<[1], [0], [0], [1], [0, 0, 1, 1], [], []>} : vector<2x128xf32>, vector<128x4xf32>, vector<2x4xf32> -> vector<2x4xf32>
    %cst_35 = arith.constant 0.001953125 : f32
    %103 = vector.broadcast %cst_35 : f32 to vector<2x4xf32>
    %104 = arith.mulf %102, %103 : vector<2x4xf32>
    %105 = vector.extract_strided_slice %104 {offsets = [0, 0], sizes = [1, 4], strides = [1, 1]} : vector<2x4xf32> to vector<1x4xf32>
    %106 = vector.extract_strided_slice %104 {offsets = [1, 0], sizes = [1, 4], strides = [1, 1]} : vector<2x4xf32> to vector<1x4xf32>
    %107 = arith.mulf %105, %105 : vector<1x4xf32>
    %108 = arith.subf %106, %107 : vector<1x4xf32>
    %cst_36 = arith.constant 0.000000e+00 : f32
    %109 = vector.broadcast %cst_36 : f32 to vector<1x4xf32>
    %110 = arith.maximumf %108, %109 : vector<1x4xf32>
    %cst_37 = arith.constant 9.99999974E-6 : f32
    %111 = vector.broadcast %cst_37 : f32 to vector<1x4xf32>
    %112 = arith.addf %110, %111 : vector<1x4xf32>
    %113 = math.rsqrt %112 : vector<1x4xf32>
    %c0_i32_38 = arith.constant 0 : i32
    %114 = vector.broadcast %c0_i32_38 : i32 to vector<2x4xi32>
    %115 = arith.cmpi eq, %16, %114 : vector<2x4xi32>
    %cst_39 = arith.constant 0.000000e+00 : f32
    %116 = vector.broadcast %cst_39 : f32 to vector<1x4xf32>
    %117 = arith.subf %116, %105 : vector<1x4xf32>
    %118 = arith.mulf %117, %113 : vector<1x4xf32>
    %119 = vector.shape_cast %113 : vector<1x4xf32> to vector<1x4xf32>
    %120 = vector.broadcast %119 : vector<1x4xf32> to vector<2x4xf32>
    %121 = vector.shape_cast %118 : vector<1x4xf32> to vector<1x4xf32>
    %122 = vector.broadcast %121 : vector<1x4xf32> to vector<2x4xf32>
    %123 = arith.select %115, %120, %122 : vector<2x4xi1>, vector<2x4xf32>
    %cst_40 = arith.constant dense<0.000000e+00> : vector<2x128xf32>
    %124 = tpu.matmul %123, %14, %cst_40 {dimension_numbers = #tpu.dot_dimension_numbers<[1], [0], [0], [1], [0, 0, 1, 1], [], []>} : vector<2x4xf32>, vector<4x128xf32>, vector<2x128xf32> -> vector<2x128xf32>
    %125 = vector.extract_strided_slice %124 {offsets = [0, 0], sizes = [1, 128], strides = [1, 1]} : vector<2x128xf32> to vector<1x128xf32>
    %126 = vector.broadcast %125 : vector<1x128xf32> to vector<16x128xf32>
    %127 = arith.mulf %89, %126 : vector<16x128xf32>
    %128 = vector.extract_strided_slice %124 {offsets = [1, 0], sizes = [1, 128], strides = [1, 1]} : vector<2x128xf32> to vector<1x128xf32>
    %129 = vector.broadcast %128 : vector<1x128xf32> to vector<16x128xf32>
    %130 = arith.addf %127, %129 : vector<16x128xf32>
    %cst_41 = arith.constant 0.000000e+00 : f32
    %131 = vector.broadcast %cst_41 : f32 to vector<16x128xf32>
    %132 = arith.maximumf %130, %131 : vector<16x128xf32>
    %c0_42 = arith.constant 0 : index
    %c0_43 = arith.constant 0 : index
    %133 = vector.load %arg6[%c0_42, %c0_43] : memref<16x8xf32, #tpu.memory_space<vmem>>, vector<16x8xf32>
    %c0_44 = arith.constant 0 : index
    %c0_45 = arith.constant 0 : index
    %134 = vector.load %arg13[%c0_44, %c0_45] : memref<16x128xf32, #tpu.memory_space<vmem>>, vector<8x128xf32>
    %cst_46 = arith.constant dense<0.000000e+00> : vector<16x128xf32>
    %135 = tpu.matmul %133, %134, %cst_46 {dimension_numbers = #tpu.dot_dimension_numbers<[1], [0], [0], [1], [0, 0, 1, 1], [], []>} : vector<16x8xf32>, vector<8x128xf32>, vector<16x128xf32> -> vector<16x128xf32>
    %c0_47 = arith.constant 0 : index
    %c0_48 = arith.constant 0 : index
    %136 = vector.load %arg7[%c0_47, %c0_48] : memref<16x1xf32, #tpu.memory_space<vmem>>, vector<16x1xf32>
    %137 = vector.broadcast %136 : vector<16x1xf32> to vector<16x128xf32>
    %138 = arith.addf %135, %137 : vector<16x128xf32>
    %139 = arith.addf %132, %138 : vector<16x128xf32>
    %cst_49 = arith.constant 0.000000e+00 : f32
    %140 = vector.broadcast %cst_49 : f32 to vector<16x128xf32>
    %141 = arith.maximumf %139, %140 : vector<16x128xf32>
    %c0_50 = arith.constant 0 : index
    %c0_51 = arith.constant 0 : index
    %142 = vector.load %arg13[%c0_50, %c0_51] : memref<16x128xf32, #tpu.memory_space<vmem>>, vector<16x128xf32>
    tpu.vector_store %arg13[%c0_50, %c0_51], %141 {strides = array<i32>} : memref<16x128xf32, #tpu.memory_space<vmem>>, vector<16x128xf32>,
    %c0_52 = arith.constant 0 : index
    %c0_53 = arith.constant 0 : index
    %143 = vector.load %arg13[%c0_52, %c0_53] : memref<16x128xf32, #tpu.memory_space<vmem>>, vector<16x128xf32>
    %c8_i32 = arith.constant 8 : i32
    %144 = tpu.dynamic_rotate %143 by %c8_i32 dim 1 : vector<16x128xf32>, i32 -> vector<16x128xf32>
    %c8_i32_54 = arith.constant 8 : i32
    %145 = vector.broadcast %c8_i32_54 : i32 to vector<1x128xi32>
    %146 = arith.cmpi slt, %0, %145 : vector<1x128xi32>
    %cst_55 = arith.constant 0.000000e+00 : f32
    %147 = vector.shape_cast %146 : vector<1x128xi1> to vector<1x128xi1>
    %148 = vector.broadcast %147 : vector<1x128xi1> to vector<16x128xi1>
    %149 = vector.broadcast %cst_55 : f32 to vector<16x128xf32>
    %150 = arith.select %148, %149, %144 : vector<16x128xi1>, vector<16x128xf32>
    %151 = tpu.concatenate %150, %143 in 0 : vector<16x128xf32>, vector<16x128xf32> -> vector<32x128xf32>
    %c0_56 = arith.constant 0 : index
    %c0_57 = arith.constant 0 : index
    %152 = vector.load %arg8[%c0_56, %c0_57] : memref<16x32xf32, #tpu.memory_space<vmem>>, vector<16x32xf32>
    %cst_58 = arith.constant dense<0.000000e+00> : vector<16x128xf32>
    %153 = tpu.matmul %152, %151, %cst_58 {dimension_numbers = #tpu.dot_dimension_numbers<[1], [0], [0], [1], [0, 0, 1, 1], [], []>} : vector<16x32xf32>, vector<32x128xf32>, vector<16x128xf32> -> vector<16x128xf32>
    %c0_59 = arith.constant 0 : index
    %c0_60 = arith.constant 0 : index
    %154 = vector.load %arg9[%c0_59, %c0_60] : memref<16x1xf32, #tpu.memory_space<vmem>>, vector<16x1xf32>
    %155 = vector.broadcast %154 : vector<16x1xf32> to vector<16x128xf32>
    %156 = arith.addf %153, %155 : vector<16x128xf32>
    %cst_61 = arith.constant dense<0.000000e+00> : vector<128xf32>
    %157 = vector.multi_reduction <add>, %156, %cst_61 [0] : vector<16x128xf32> to vector<128xf32>
    %158 = vector.shape_cast %157 : vector<128xf32> to vector<1x128xf32>
    %159 = arith.mulf %156, %156 : vector<16x128xf32>
    %cst_62 = arith.constant dense<0.000000e+00> : vector<128xf32>
    %160 = vector.multi_reduction <add>, %159, %cst_62 [0] : vector<16x128xf32> to vector<128xf32>
    %161 = vector.shape_cast %160 : vector<128xf32> to vector<1x128xf32>
    %c0_i32_63 = arith.constant 0 : i32
    %162 = vector.broadcast %c0_i32_63 : i32 to vector<2x128xi32>
    %163 = arith.cmpi eq, %15, %162 : vector<2x128xi32>
    %164 = vector.shape_cast %158 : vector<1x128xf32> to vector<1x128xf32>
    %165 = vector.broadcast %164 : vector<1x128xf32> to vector<2x128xf32>
    %166 = vector.shape_cast %161 : vector<1x128xf32> to vector<1x128xf32>
    %167 = vector.broadcast %166 : vector<1x128xf32> to vector<2x128xf32>
    %168 = arith.select %163, %165, %167 : vector<2x128xi1>, vector<2x128xf32>
    %cst_64 = arith.constant dense<0.000000e+00> : vector<2x4xf32>
    %169 = tpu.matmul %168, %7, %cst_64 {dimension_numbers = #tpu.dot_dimension_numbers<[1], [0], [0], [1], [0, 0, 1, 1], [], []>} : vector<2x128xf32>, vector<128x4xf32>, vector<2x4xf32> -> vector<2x4xf32>
    %cst_65 = arith.constant 0.001953125 : f32
    %170 = vector.broadcast %cst_65 : f32 to vector<2x4xf32>
    %171 = arith.mulf %169, %170 : vector<2x4xf32>
    %172 = vector.extract_strided_slice %171 {offsets = [0, 0], sizes = [1, 4], strides = [1, 1]} : vector<2x4xf32> to vector<1x4xf32>
    %173 = vector.extract_strided_slice %171 {offsets = [1, 0], sizes = [1, 4], strides = [1, 1]} : vector<2x4xf32> to vector<1x4xf32>
    %174 = arith.mulf %172, %172 : vector<1x4xf32>
    %175 = arith.subf %173, %174 : vector<1x4xf32>
    %cst_66 = arith.constant 0.000000e+00 : f32
    %176 = vector.broadcast %cst_66 : f32 to vector<1x4xf32>
    %177 = arith.maximumf %175, %176 : vector<1x4xf32>
    %cst_67 = arith.constant 9.99999974E-6 : f32
    %178 = vector.broadcast %cst_67 : f32 to vector<1x4xf32>
    %179 = arith.addf %177, %178 : vector<1x4xf32>
    %180 = math.rsqrt %179 : vector<1x4xf32>
    %c0_i32_68 = arith.constant 0 : i32
    %181 = vector.broadcast %c0_i32_68 : i32 to vector<2x4xi32>
    %182 = arith.cmpi eq, %16, %181 : vector<2x4xi32>
    %cst_69 = arith.constant 0.000000e+00 : f32
    %183 = vector.broadcast %cst_69 : f32 to vector<1x4xf32>
    %184 = arith.subf %183, %172 : vector<1x4xf32>
    %185 = arith.mulf %184, %180 : vector<1x4xf32>
    %186 = vector.shape_cast %180 : vector<1x4xf32> to vector<1x4xf32>
    %187 = vector.broadcast %186 : vector<1x4xf32> to vector<2x4xf32>
    %188 = vector.shape_cast %185 : vector<1x4xf32> to vector<1x4xf32>
    %189 = vector.broadcast %188 : vector<1x4xf32> to vector<2x4xf32>
    %190 = arith.select %182, %187, %189 : vector<2x4xi1>, vector<2x4xf32>
    %cst_70 = arith.constant dense<0.000000e+00> : vector<2x128xf32>
    %191 = tpu.matmul %190, %14, %cst_70 {dimension_numbers = #tpu.dot_dimension_numbers<[1], [0], [0], [1], [0, 0, 1, 1], [], []>} : vector<2x4xf32>, vector<4x128xf32>, vector<2x128xf32> -> vector<2x128xf32>
    %192 = vector.extract_strided_slice %191 {offsets = [0, 0], sizes = [1, 128], strides = [1, 1]} : vector<2x128xf32> to vector<1x128xf32>
    %193 = vector.broadcast %192 : vector<1x128xf32> to vector<16x128xf32>
    %194 = arith.mulf %156, %193 : vector<16x128xf32>
    %195 = vector.extract_strided_slice %191 {offsets = [1, 0], sizes = [1, 128], strides = [1, 1]} : vector<2x128xf32> to vector<1x128xf32>
    %196 = vector.broadcast %195 : vector<1x128xf32> to vector<16x128xf32>
    %197 = arith.addf %194, %196 : vector<16x128xf32>
    %cst_71 = arith.constant 0.000000e+00 : f32
    %198 = vector.broadcast %cst_71 : f32 to vector<16x128xf32>
    %199 = arith.maximumf %197, %198 : vector<16x128xf32>
    %c8_i32_72 = arith.constant 8 : i32
    %200 = tpu.dynamic_rotate %199 by %c8_i32_72 dim 1 : vector<16x128xf32>, i32 -> vector<16x128xf32>
    %c8_i32_73 = arith.constant 8 : i32
    %201 = vector.broadcast %c8_i32_73 : i32 to vector<1x128xi32>
    %202 = arith.cmpi slt, %0, %201 : vector<1x128xi32>
    %cst_74 = arith.constant 0.000000e+00 : f32
    %203 = vector.shape_cast %202 : vector<1x128xi1> to vector<1x128xi1>
    %204 = vector.broadcast %203 : vector<1x128xi1> to vector<16x128xi1>
    %205 = vector.broadcast %cst_74 : f32 to vector<16x128xf32>
    %206 = arith.select %204, %205, %200 : vector<16x128xi1>, vector<16x128xf32>
    %207 = tpu.concatenate %206, %199 in 0 : vector<16x128xf32>, vector<16x128xf32> -> vector<32x128xf32>
    %c0_75 = arith.constant 0 : index
    %c0_76 = arith.constant 0 : index
    %208 = vector.load %arg10[%c0_75, %c0_76] : memref<16x32xf32, #tpu.memory_space<vmem>>, vector<16x32xf32>
    %cst_77 = arith.constant dense<0.000000e+00> : vector<16x128xf32>
    %209 = tpu.matmul %208, %207, %cst_77 {dimension_numbers = #tpu.dot_dimension_numbers<[1], [0], [0], [1], [0, 0, 1, 1], [], []>} : vector<16x32xf32>, vector<32x128xf32>, vector<16x128xf32> -> vector<16x128xf32>
    %c0_78 = arith.constant 0 : index
    %c0_79 = arith.constant 0 : index
    %210 = vector.load %arg11[%c0_78, %c0_79] : memref<16x1xf32, #tpu.memory_space<vmem>>, vector<16x1xf32>
    %211 = vector.broadcast %210 : vector<16x1xf32> to vector<16x128xf32>
    %212 = arith.addf %209, %211 : vector<16x128xf32>
    %cst_80 = arith.constant dense<0.000000e+00> : vector<128xf32>
    %213 = vector.multi_reduction <add>, %212, %cst_80 [0] : vector<16x128xf32> to vector<128xf32>
    %214 = vector.shape_cast %213 : vector<128xf32> to vector<1x128xf32>
    %215 = arith.mulf %212, %212 : vector<16x128xf32>
    %cst_81 = arith.constant dense<0.000000e+00> : vector<128xf32>
    %216 = vector.multi_reduction <add>, %215, %cst_81 [0] : vector<16x128xf32> to vector<128xf32>
    %217 = vector.shape_cast %216 : vector<128xf32> to vector<1x128xf32>
    %c0_i32_82 = arith.constant 0 : i32
    %218 = vector.broadcast %c0_i32_82 : i32 to vector<2x128xi32>
    %219 = arith.cmpi eq, %15, %218 : vector<2x128xi32>
    %220 = vector.shape_cast %214 : vector<1x128xf32> to vector<1x128xf32>
    %221 = vector.broadcast %220 : vector<1x128xf32> to vector<2x128xf32>
    %222 = vector.shape_cast %217 : vector<1x128xf32> to vector<1x128xf32>
    %223 = vector.broadcast %222 : vector<1x128xf32> to vector<2x128xf32>
    %224 = arith.select %219, %221, %223 : vector<2x128xi1>, vector<2x128xf32>
    %cst_83 = arith.constant dense<0.000000e+00> : vector<2x4xf32>
    %225 = tpu.matmul %224, %7, %cst_83 {dimension_numbers = #tpu.dot_dimension_numbers<[1], [0], [0], [1], [0, 0, 1, 1], [], []>} : vector<2x128xf32>, vector<128x4xf32>, vector<2x4xf32> -> vector<2x4xf32>
    %cst_84 = arith.constant 0.001953125 : f32
    %226 = vector.broadcast %cst_84 : f32 to vector<2x4xf32>
    %227 = arith.mulf %225, %226 : vector<2x4xf32>
    %228 = vector.extract_strided_slice %227 {offsets = [0, 0], sizes = [1, 4], strides = [1, 1]} : vector<2x4xf32> to vector<1x4xf32>
    %229 = vector.extract_strided_slice %227 {offsets = [1, 0], sizes = [1, 4], strides = [1, 1]} : vector<2x4xf32> to vector<1x4xf32>
    %230 = arith.mulf %228, %228 : vector<1x4xf32>
    %231 = arith.subf %229, %230 : vector<1x4xf32>
    %cst_85 = arith.constant 0.000000e+00 : f32
    %232 = vector.broadcast %cst_85 : f32 to vector<1x4xf32>
    %233 = arith.maximumf %231, %232 : vector<1x4xf32>
    %cst_86 = arith.constant 9.99999974E-6 : f32
    %234 = vector.broadcast %cst_86 : f32 to vector<1x4xf32>
    %235 = arith.addf %233, %234 : vector<1x4xf32>
    %236 = math.rsqrt %235 : vector<1x4xf32>
    %c0_i32_87 = arith.constant 0 : i32
    %237 = vector.broadcast %c0_i32_87 : i32 to vector<2x4xi32>
    %238 = arith.cmpi eq, %16, %237 : vector<2x4xi32>
    %cst_88 = arith.constant 0.000000e+00 : f32
    %239 = vector.broadcast %cst_88 : f32 to vector<1x4xf32>
    %240 = arith.subf %239, %228 : vector<1x4xf32>
    %241 = arith.mulf %240, %236 : vector<1x4xf32>
    %242 = vector.shape_cast %236 : vector<1x4xf32> to vector<1x4xf32>
    %243 = vector.broadcast %242 : vector<1x4xf32> to vector<2x4xf32>
    %244 = vector.shape_cast %241 : vector<1x4xf32> to vector<1x4xf32>
    %245 = vector.broadcast %244 : vector<1x4xf32> to vector<2x4xf32>
    %246 = arith.select %238, %243, %245 : vector<2x4xi1>, vector<2x4xf32>
    %cst_89 = arith.constant dense<0.000000e+00> : vector<2x128xf32>
    %247 = tpu.matmul %246, %14, %cst_89 {dimension_numbers = #tpu.dot_dimension_numbers<[1], [0], [0], [1], [0, 0, 1, 1], [], []>} : vector<2x4xf32>, vector<4x128xf32>, vector<2x128xf32> -> vector<2x128xf32>
    %248 = vector.extract_strided_slice %247 {offsets = [0, 0], sizes = [1, 128], strides = [1, 1]} : vector<2x128xf32> to vector<1x128xf32>
    %249 = vector.broadcast %248 : vector<1x128xf32> to vector<16x128xf32>
    %250 = arith.mulf %212, %249 : vector<16x128xf32>
    %251 = vector.extract_strided_slice %247 {offsets = [1, 0], sizes = [1, 128], strides = [1, 1]} : vector<2x128xf32> to vector<1x128xf32>
    %252 = vector.broadcast %251 : vector<1x128xf32> to vector<16x128xf32>
    %253 = arith.addf %250, %252 : vector<16x128xf32>
    %cst_90 = arith.constant 0.000000e+00 : f32
    %254 = vector.broadcast %cst_90 : f32 to vector<16x128xf32>
    %255 = arith.maximumf %253, %254 : vector<16x128xf32>
    %c0_91 = arith.constant 0 : index
    %c0_92 = arith.constant 0 : index
    %256 = vector.load %arg13[%c0_91, %c0_92] : memref<16x128xf32, #tpu.memory_space<vmem>>, vector<16x128xf32>
    %257 = arith.addf %255, %256 : vector<16x128xf32>
    %cst_93 = arith.constant 0.000000e+00 : f32
    %258 = vector.broadcast %cst_93 : f32 to vector<16x128xf32>
    %259 = arith.maximumf %257, %258 : vector<16x128xf32>
    %c0_94 = arith.constant 0 : index
    %c0_95 = arith.constant 0 : index
    %260 = vector.load %arg13[%c0_94, %c0_95] : memref<16x128xf32, #tpu.memory_space<vmem>>, vector<16x128xf32>
    tpu.vector_store %arg13[%c0_94, %c0_95], %259 {strides = array<i32>} : memref<16x128xf32, #tpu.memory_space<vmem>>, vector<16x128xf32>,
    %c0_96 = arith.constant 0 : index
    %c0_97 = arith.constant 0 : index
    %c0_98 = arith.constant 0 : index
    %261 = vector.load %arg12[%c0_96, %c0_97, %c0_98] : memref<1x16x128xf32, #tpu.memory_space<vmem>>, vector<1x16x128xf32>
    %262 = vector.shape_cast %261 : vector<1x16x128xf32> to vector<16x128xf32>
    %263 = vector.shape_cast %259 : vector<16x128xf32> to vector<1x16x128xf32>
    tpu.vector_store %arg12[%c0_96, %c0_97, %c0_98], %263 {strides = array<i32>} : memref<1x16x128xf32, #tpu.memory_space<vmem>>, vector<1x16x128xf32>,
    return
  }
  func.func @transform_0(%arg0: i32) -> (i32, i32, i32) {
    %c0_i32 = arith.constant 0 : i32
    %c0_i32_0 = arith.constant 0 : i32
    %c0_i32_1 = arith.constant 0 : i32
    return %arg0, %c0_i32, %c0_i32_0 : i32, i32, i32
  }
  func.func @transform_1(%arg0: i32) -> (i32, i32) {
    %c0_i32 = arith.constant 0 : i32
    %c0_i32_0 = arith.constant 0 : i32
    %c0_i32_1 = arith.constant 0 : i32
    return %c0_i32, %c0_i32_0 : i32, i32
  }
  func.func @transform_2(%arg0: i32) -> (i32, i32) {
    %c0_i32 = arith.constant 0 : i32
    %c0_i32_0 = arith.constant 0 : i32
    %c0_i32_1 = arith.constant 0 : i32
    return %c0_i32, %c0_i32_0 : i32, i32
  }
  func.func @transform_3(%arg0: i32) -> (i32, i32) {
    %c0_i32 = arith.constant 0 : i32
    %c0_i32_0 = arith.constant 0 : i32
    %c0_i32_1 = arith.constant 0 : i32
    return %c0_i32, %c0_i32_0 : i32, i32
  }
  func.func @transform_4(%arg0: i32) -> (i32, i32) {
    %c0_i32 = arith.constant 0 : i32
    %c0_i32_0 = arith.constant 0 : i32
    %c0_i32_1 = arith.constant 0 : i32
    return %c0_i32, %c0_i32_0 : i32, i32
  }
  func.func @transform_5(%arg0: i32) -> (i32, i32) {
    %c0_i32 = arith.constant 0 : i32
    %c0_i32_0 = arith.constant 0 : i32
    %c0_i32_1 = arith.constant 0 : i32
    return %c0_i32, %c0_i32_0 : i32, i32
  }
  func.func @transform_6(%arg0: i32) -> (i32, i32) {
    %c0_i32 = arith.constant 0 : i32
    %c0_i32_0 = arith.constant 0 : i32
    %c0_i32_1 = arith.constant 0 : i32
    return %c0_i32, %c0_i32_0 : i32, i32
  }
  func.func @transform_7(%arg0: i32) -> (i32, i32) {
    %c0_i32 = arith.constant 0 : i32
    %c0_i32_0 = arith.constant 0 : i32
    %c0_i32_1 = arith.constant 0 : i32
    return %c0_i32, %c0_i32_0 : i32, i32
  }
  func.func @transform_8(%arg0: i32) -> (i32, i32) {
    %c0_i32 = arith.constant 0 : i32
    %c0_i32_0 = arith.constant 0 : i32
    %c0_i32_1 = arith.constant 0 : i32
    return %c0_i32, %c0_i32_0 : i32, i32
  }
  func.func @transform_9(%arg0: i32) -> (i32, i32) {
    %c0_i32 = arith.constant 0 : i32
    %c0_i32_0 = arith.constant 0 : i32
    %c0_i32_1 = arith.constant 0 : i32
    return %c0_i32, %c0_i32_0 : i32, i32
  }
  func.func @transform_10(%arg0: i32) -> (i32, i32) {
    %c0_i32 = arith.constant 0 : i32
    %c0_i32_0 = arith.constant 0 : i32
    %c0_i32_1 = arith.constant 0 : i32
    return %c0_i32, %c0_i32_0 : i32, i32
  }
  func.func @transform_11(%arg0: i32) -> (i32, i32, i32) {
    %c0_i32 = arith.constant 0 : i32
    %c0_i32_0 = arith.constant 0 : i32
    %c0_i32_1 = arith.constant 0 : i32
    return %arg0, %c0_i32, %c0_i32_0 : i32, i32, i32
  }
}

</mosaic_0001>

<bundles_post_ra>
// kernel: tpu_custom_call.1
= control target key start
LH: loop header
LB: loop body
LE: loop exit
PB: predicated region body
PF: predicated region fallthrough
CT: control target
= control target key end

     0   :  { %s3240_s0 = inlined_call_operand.vmem [shape: f32[8,8,128], index: 0, kind: input, shape index: {}]   ;;  %s3241_s1 = inlined_call_operand.vmem [shape: f32[16,16], index: 1, kind: input, shape index: {}]   ;;  %s3242_s2 = inlined_call_operand.vmem [shape: f32[16,1], index: 2, kind: input, shape index: {}]   ;;  %s3243_s3 = inlined_call_operand.vmem [shape: f32[16,32], index: 3, kind: input, shape index: {}]   ;;  %s3244_s4 = inlined_call_operand.vmem [shape: f32[16,1], index: 4, kind: input, shape index: {}]   ;;  %s3245_s5 = inlined_call_operand.vmem [shape: f32[16,8], index: 5, kind: input, shape index: {}]   ;;  %s3246_s6 = inlined_call_operand.vmem [shape: f32[16,1], index: 6, kind: input, shape index: {}]   ;;  %s3247_s7 = inlined_call_operand.vmem [shape: f32[16,32], index: 7, kind: input, shape index: {}]   ;;  %s3248_s8 = inlined_call_operand.vmem [shape: f32[16,1], index: 8, kind: input, shape index: {}]   ;;  %s3249_s9 = inlined_call_operand.hbm [shape: f32[16,32], index: 9, kind: input, shape index: {}]   ;;  %s3250_s10 = inlined_call_operand.vmem [shape: f32[16,1], index: 10, kind: input, shape index: {}]   ;;  %s3251_s11 = inlined_call_operand.hbm [shape: f32[8,16,128], index: 11, kind: output, shape index: {}]  }
   0x1   :  { %3274 = sst [smem:[#allocation9_spill]] %s3240_s0 }
   0x2   :  { %16 = vsyncpa [#allocation4], 0 }
   0x3   :  { %17 = vsyncpa [#allocation5], 0 }
   0x4   :  { %19 = vsyncpa [#allocation5 + $0x1], 0  ;;  %s2557_s17 = smov 0   ;;  %s2559_s18 = smov 0  }
   0x5   :  { %s2561_s19 = smov 0   ;;  %s2563_s20 = smov 0  }
   0x6 LB: > { %s2578_s21 = sadd.s32 4294967295, %s2484_s20   ;;  %s1890_s22 = sadd.s32 4294967294, %s2484_s20   ;;  %s2484_s20 = sphi %s2563_s20, %s3354_s20   ;;  %s2480_s19 = sphi %s2561_s19, %s3353_s19   ;;  %s2476_s18 = sphi %s2559_s18, %s3352_s18   ;;  %s2472_s17 = sphi %s2557_s17, %s3351_s17  }
   0x7   : > { %s2582_s23 = sadd.s32 1, %s2484_s20   ;;  %s268_s24 = sadd.s32 1, %s2480_s19 }
   0x8   : > { %s265_s25 = ssub.s32 %s2484_s20, %s2582_s23  ;;  %p278_p0 = scmp.ne.s32.totalorder %s2480_s19, %s2476_s18 }
   0x9   : > { %p266_p1 = scmp.eq.s32.totalorder %s265_s25, 0  ;;  %p279_p2 = scmp.eq.s32.totalorder %s2578_s21, 7 }
   0xa   : > { %p284_p3 = scmp.ne.s32.totalorder %s2476_s18, %s2472_s17  ;;  %p285_p4 = scmp.eq.s32.totalorder %s1890_s22, 7 }
   0xb   : > { %s2593_s26 = scalar_select %p266_p1, %s2480_s19, %s268_s24  }
   0xc   : > { %p2595_p5 = por %p279_p2, %p278_p0  ;;  %p2599_p6 = por %p285_p4, %p284_p3 }
   0xd   : > { %p1891_p7 = scmp.ge.s32.totalorder %s2484_s20, 1  ;;  %p292_p8 = scmp.lt.s32.totalorder %s2484_s20, 9 }
   0xe   : > { %s3276_s28 = scalar_select %p2599_p6, 1, 0 }
   0xf   : > { %p2339_p9 = scmp.eq.s32.totalorder %s2578_s21, 0  ;;  %p2606_p10 = pnand %p1891_p7, %p292_p8 }
  0x10   : > { %s2486_s30 = smov [#allocation3]  }
  0x11   : > { %s328_s12 = sshll.u32 %s2486_s30, 4  ;;  %p2331_p11 = pneg %p2606_p10  ;;  %s329_s12 = int_to_ptr.vmem [resolvable:$true] %s328_s12 }
  0x12   : > { %s2405_s13 = scalar_lea.vmem %s329_s12, 256  ;;  %p2413_p3 = scmp.lt.s32.totalorder %s329_s12, %s329_s12 }
  0x13   : > { %p2332_p12 = pnand %p2339_p9, %p2331_p11  ;;  %p2406_p0 = scmp.ne.s32.totalorder %s329_s12, %s2405_s13 }
  0x14   : > { %p2414_p4 = scmp.lt.s32.totalorder %s2405_s13, %s2405_s13 }
  0x15   : > { %p2396_p13 = pneg %p2332_p12 }
  0x16   : > { %p2415_p6 = por %p2414_p4, %p2413_p3 }
  0x17   : > { %p2408_p1 = pnand %p2406_p0, %p2396_p13 }
  0x19   : > { %p2409_p2 = pneg %p2408_p1 }
  0x1b   : > { %p2416_p7 = pnand %p2415_p6, %p2409_p2 }
  0x1d   : > { %2419 = shalt.err (!%p2416_p7)
}
  0x1e   : > { %s2487_s14 = smov 128   ;;  %s2488_s15 = smov 8  }
  0x1f   : > { %2334 = dma.hbm_to_vmem [thread:$0]  (!%p2332_p12), %s3249_s9, 256, %s329_s12, [#allocation4], %s2487_s14, %s2487_s14, %s2488_s15  }
  0x20   : > { %354 = sbr.rel (%p2606_p10) target bundleno = 3108 (0xc24), region = 64 }
  0x25   : > { %2463 = dma.done.wait (%p2339_p9), [#allocation4], 256  }
  0x26   : > { %2465 = vsyncadd (%p2339_p9), [#allocation4], 4294967040  ;;  %p393_p8 = scmp.lt.s32.totalorder %s2578_s21, 7  ;;  %v397_v0 = vlaneseq  ;;  %v2489_v1 = vmov 0   ;;  %v2490_v3 = vmov 0.0   ;;  %s3278_s0 = sld [smem:[#allocation9_spill]] }
  0x27   : > { %2384 = vset.pattern.permute.xlu0 %v2489_v1  ;;  %2385 = vset.pattern.permute.xlu1 %v2489_v1  ;;  %vm507_vm0 = vcmask 130048   ;;  %v493_v10 = vld [vmem:[%s3241_s1] sm:$0xff]  ;;  %s2491_s15 = smov 4   ;;  %v496_v13 = vld [vmem:[%s3242_s2 + $0x8] sm:$0xff]  ;;  %v2492_v19 = vmov 1.0   ;;  %v3299_v47 = vmov 0 }
  0x28   : > { %s394_s24 = scalar_select %p393_p8, %s2578_s21, 7  ;;  %v2625_v2 = vshrl.u32 %v397_v0, 7  ;;  %2127 = vmatprep.subr.mxu1 %v2490_v3  ;;  %v2633_v6 = vand.u32 127, %v397_v0  ;;  %2124 = vmatprep.mubr.msk.f32.mxu0 %vm507_vm0, %v493_v10  ;;  %v495_v15 = vld [vmem:[%s3242_s2] sm:$0xff]  ;;  %v1094_v26 = vld [vmem:[%s3246_s6 + $0x8] sm:$0xff]  ;;  %v3301_v52 = vmov 0 }
  0x29   : > { %504 = vperm.xlu1 %2385, %v496_v13   ;;  %v800_v22 = vld [vmem:[%s3244_s4] sm:$0xff]  ;;  %v494_v28 = vld [vmem:[%s3241_s1 + $0x8] sm:$0xff]  ;;  %vm3252_vm14 = vmmov 0   ;;  %v3303_v56 = vmov 0  ;;  %v3305_v58 = vmov 0  ;;  %v3307_v59 = vmov 0 }
  0x2a   : > { %s1897_s25 = sshll.u32 %s394_s24, 3  ;;  %v415_v4 = vadd.s32 120, %v2625_v2  ;;  %v414_v5 = vadd.s32 112, %v2625_v2  ;;  %v413_v11 = vadd.s32 104, %v2625_v2  ;;  %v412_v12 = vadd.s32 96, %v2625_v2  ;;  %2159 = vmatprep.mubr.msk.f32.mxu1 %vm3252_vm14, %v2490_v3  ;;  %s3273_s30 = smov 8  }
  0x2b   : > { %v411_v21 = vadd.s32 88, %v2625_v2  ;;  %vm3254_vm6 = vcmp.ge.s32.totalorder %v2633_v6, 4  ;;  %v410_v29 = vadd.s32 80, %v2625_v2  ;;  %v409_v31 = vadd.s32 72, %v2625_v2  ;;  %s390_s13 = sand.u32 1, %s2476_s18   ;;  %s2016_s16 = sshll.u32 %s2578_s21, 8 }
  0x2c   : > { %s396_s12 = scalar_lea.vmem %s3278_s0, %s1897_s25  ;;  %v431_v7 = vand.u32 3, %v415_v4  ;;  %v430_v8 = vand.u32 3, %v414_v5  ;;  %v429_v17 = vand.u32 3, %v413_v11  ;;  %v428_v18 = vand.u32 3, %v412_v12  ;;  %s1896_s14 = sshll.u32 %s390_s13, 4 }
  0x2d   : > { %v2635_v9 = vld [vmem:[%s396_s12] sm:$0xff]  ;;  %v427_v24 = vand.u32 3, %v411_v21  ;;  %v426_v30 = vand.u32 3, %v410_v29  ;;  %v425_v33 = vand.u32 3, %v409_v31  ;;  %v408_v34 = vadd.s32 64, %v2625_v2  ;;  %v1092_v31 = vld [vmem:[%s3245_s5 + $0x8] sm:$0xff]  ;;  %s3195_s29 = scalar_lea.hbm %s3251_s11, %s2016_s16 }
  0x2e   : > { %487 = vrot.lane.b32.xlu0 %v2635_v9, %s2491_s15  ;;  %2120 = vmatprep.subr.mxu0 %v2635_v9  ;;  %vm2649_vm1 = vcmp.eq.s32.totalorder %v431_v7, %v2633_v6  ;;  %vm2659_vm2 = vcmp.eq.s32.totalorder %v430_v8, %v2633_v6  ;;  %vm2668_vm3 = vcmp.eq.s32.totalorder %v429_v17, %v2633_v6  ;;  %v407_v37 = vadd.s32 56, %v2625_v2  ;;  %v1091_v29 = vld [vmem:[%s3245_s5] sm:$0xff]  ;;  %s392_s22 = scalar_lea.vmem [#allocation6], %s1896_s14  ;;  %s3199_s21 = scalar_lea.sflag [#allocation5], %s390_s13 }
  0x2f   : > { %2121 = vmatpush3.msra.mxu0 %v2635_v9  ;;  %2128 = vmatpush3.msk.msra.mxu1 %vm2649_vm1, %v2492_v19  ;;  %vm2681_vm4 = vcmp.eq.s32.totalorder %v428_v18, %v2633_v6  ;;  %vm2690_vm5 = vcmp.eq.s32.totalorder %v427_v24, %v2633_v6  ;;  %vm2718_vm7 = vcmp.eq.s32.totalorder %v426_v30, %v2633_v6  ;;  %v424_v36 = vand.u32 3, %v408_v34  ;;  %s1816_s24 = sshll.u32 %s392_s22, 4  ;;  %s2495_s14 = smov [#allocation6]   ;;  %s3197_s24 = int_to_ptr.vmem [resolvable:$true] %s1816_s24 }
  0x30   : > { %2129 = vmatprep.subr.mxu1 %v2490_v3  ;;  %vm2728_vm8 = vcmp.eq.s32.totalorder %v425_v33, %v2633_v6  ;;  %v423_v39 = vand.u32 3, %v407_v37  ;;  %v406_v40 = vadd.s32 48, %v2625_v2  ;;  %v405_v43 = vadd.s32 40, %v2625_v2  ;;  %s2420_s12 = scalar_lea.vmem %s3197_s24, 256 }
  0x31   : > { %2130 = vmatpush3.msk.msra.mxu1 %vm2659_vm2, %v2492_v19  ;;  %vm2738_vm9 = vcmp.eq.s32.totalorder %v424_v36, %v2633_v6  ;;  %v404_v46 = vadd.s32 32, %v2625_v2  ;;  %v403_v49 = vadd.s32 24, %v2625_v2  ;;  %v402_v50 = vadd.s32 16, %v2625_v2  ;;  %p2421_p6 = scmp.ne.s32.totalorder %s3197_s24, %s2420_s12 }
  0x32   : > { %499 = vperm.xlu0 %2384, %v495_v15   ;;  %2131 = vmatprep.subr.mxu1 %v2490_v3  ;;  %vm2748_vm10 = vcmp.eq.s32.totalorder %v423_v39, %v2633_v6  ;;  %v422_v42 = vand.u32 3, %v406_v40  ;;  %v421_v45 = vand.u32 3, %v405_v43  ;;  %v401_v51 = vadd.s32 8, %v2625_v2 }
  0x33   : > { %2132 = vmatpush3.msk.msra.mxu1 %vm2668_vm3, %v2492_v19  ;;  %v420_v48 = vand.u32 3, %v404_v46  ;;  %v419_v53 = vand.u32 3, %v403_v49  ;;  %v418_v54 = vand.u32 3, %v402_v50  ;;  %v416_v57 = vand.u32 3, %v2625_v2  ;;  %p2422_p9 = pnand %p2421_p6, %p2595_p5 }
  0x34   : > { %2133 = vmatprep.subr.mxu1 %v2490_v3  ;;  %vm2758_vm11 = vcmp.eq.s32.totalorder %v422_v42, %v2633_v6  ;;  %vm2768_vm12 = vcmp.eq.s32.totalorder %v421_v45, %v2633_v6  ;;  %v417_v55 = vand.u32 3, %v401_v51  ;;  %v3309_v60 = vmov 0 }
  0x35   : > { %2134 = vmatpush3.msk.msra.mxu1 %vm2681_vm4, %v2492_v19  ;;  %v3300_v47 = vsel %vm2768_vm12, 4294967295, %v3299_v47  ;;  %vm2780_vm13 = vcmp.eq.s32.totalorder %v420_v48, %v2633_v6  ;;  %vm2793_vm15 = vcmp.eq.s32.totalorder %v419_v53, %v2633_v6  ;;  %v480_v33 = vand.u32 3, %v2633_v6  ;;  %p2423_p10 = pneg %p2422_p9 }
  0x36   : > { %804 = vperm.xlu0 %2384, %v800_v22   ;;  %2135 = vmatprep.subr.mxu1 %v2490_v3  ;;  %v3302_v52 = vsel %vm2780_vm13, 4294967295, %v3301_v52  ;;  %v3304_v56 = vsel %vm2793_vm15, 4294967295, %v3303_v56  ;;  %v2847_v50 = vsub.s32 0, %v2625_v2  ;;  %v2850_v51 = vsub.s32 1, %v2625_v2 }
  0x37   : > { %2136 = vmatpush3.msk.msra.mxu1 %vm2690_vm5, %v2492_v19 }
  0x38   : > { %2137 = vmatprep.subr.mxu1 %v2490_v3 }
  0x39   : > { %2138 = vmatpush3.msk.msra.mxu1 %vm2718_vm7, %v2492_v19 }
  0x3a   : > { %1102 = vperm.xlu0 %2384, %v1094_v26   ;;  %2139 = vmatprep.subr.mxu1 %v2490_v3 }
  0x3b   : > { %2140 = vmatpush3.msk.msra.mxu1 %vm2728_vm8, %v2492_v19 }
  0x3c   : > { %2141 = vmatprep.subr.mxu1 %v2490_v3 }
  0x3d   : > { %2142 = vmatpush3.msk.msra.mxu1 %vm2738_vm9, %v2492_v19 }
  0x3e   : > { %2143 = vmatprep.subr.mxu1 %v2490_v3 }
  0x3f   : > { %2144 = vmatpush3.msk.msra.mxu1 %vm2748_vm10, %v2492_v19 }
  0x40   : > { %2145 = vmatprep.subr.mxu1 %v2490_v3 }
  0x41   : > { %2146 = vmatpush3.msk.msra.mxu1 %vm2758_vm11, %v2492_v19 }
  0x42   : > { %2147 = vmatprep.subr.mxu1 %v2490_v3 }
  0x43   : > { %2148 = vmatpush3.msk.msra.mxu1 %vm2768_vm12, %v2492_v19 }
  0x44   : > { %2149 = vmatprep.subr.mxu1 %v2490_v3 }
  0x45   : > { %2150 = vmatpush3.msk.msra.mxu1 %vm2780_vm13, %v2492_v19  ;;  %vm3315_vm13 = vcmask 261120  }
  0x46   : > { %2151 = vmatprep.subr.mxu1 %v2490_v3 }
  0x47   : > { %2152 = vmatpush3.msk.msra.mxu1 %vm2793_vm15, %v2492_v19  ;;  %vm3264_vm15 = vcmask 1043456  }
  0x48   : > { %2153 = vmatprep.subr.mxu1 %v2490_v3 }
  0xa0   : > { %v488_v27 = vpop.permute.xlu0 %487 }
  0xa1   : > { %2122 = vmatprep.subr.msk.mxu0 %vm3254_vm6, %v488_v27 }
  0xa2   : > { %2123 = vmatpush3.msk.msra.mxu0 %vm3254_vm6, %v488_v27  ;;  %vm2817_vm6 = vcmp.eq.s32.totalorder %v416_v57, %v2633_v6 }
  0xa3   : > { %2125 = vmatmul.mubr.msk.f32.vlgmr.msra.gmra.mxu0 %vm507_vm0, %v494_v28  ;;  %2162 = vmatprep.subr.mxu0 %v2490_v3  ;;  %vm2802_vm0 = vcmp.eq.s32.totalorder %v418_v54, %v2633_v6  ;;  %v3310_v60 = vsel %vm2817_vm6, 4294967295, %v3309_v60 }
  0xa4   : > { %2164 = vmatprep.mubr.msk.f32.mxu0 %vm3252_vm14, %v2490_v3  ;;  %v3306_v58 = vsel %vm2802_vm0, 4294967295, %v3305_v58  ;;  %vm2808_vm14 = vcmp.eq.s32.totalorder %v417_v55, %v2633_v6  ;;  %2154 = vmatpush3.msk.msra.mxu1 %vm2802_vm0, %v2492_v19  ;;  %v505_v61 = vpop.permute.xlu1 %504  ;;  %vm481_vm0 = vcmp.eq.s32.totalorder %v2625_v2, %v480_v33 }
  0xa5   : > { %v3308_v59 = vsel %vm2808_vm14, 4294967295, %v3307_v59  ;;  %2155 = vmatprep.subr.mxu1 %v2490_v3  ;;  %v2842_v34 = vsel %vm481_vm0, 1.0, %v2490_v3  ;;  %vm3266_vm0 = vcmask 261120  }
  0xa6   : > { %2156 = vmatpush3.msk.msra.mxu1 %vm2808_vm14, %v2492_v19  ;;  %vm1105_vm14 = vcmask 64512   ;;  %2163 = vmatpush3.msk.msra.mxu0 %vm3264_vm15, %v2842_v34 }
  0xa7   : > { %2157 = vmatprep.subr.mxu1 %v2490_v3 }
  0xa8   : > { %2158 = vmatpush3.msk.msra.mxu1 %vm2817_vm6, %v2492_v19  ;;  %vm3265_vm6 = vcmp.eq.s32.totalorder %v2625_v2, 0 }
  0xa9   : > { %2218 = vmatprep.subr.mxu1 %v2635_v9 }
  0xad   : > { %v500_v0 = vpop.permute.xlu0 %499 }
 0x163   : > { %v2126_v62 = vpop.f32.mrf.mxu0 }
 0x164   : > { %v586_v63 = vadd.f32 %v2126_v62, %v505_v61  ;;  %v798_v62 = vld [vmem:[%s3243_s3] sm:$0xff] }
 0x165   : > { %v580_v1 = vpop.f32.mrf.mxu0 }
 0x166   : > { %v581_v4 = vadd.f32 %v580_v1, %v500_v0  ;;  %v597_v5 = vmul.f32 %v586_v63, %v586_v63 }
 0x168   : > { %v589_v7 = vadd.f32 %v586_v63, %v581_v4  ;;  %v596_v8 = vmul.f32 %v581_v4, %v581_v4 }
 0x16a   : > { %v590_v10 = vrot.slane %v589_v7, 4  ;;  %v598_v11 = vadd.f32 %v597_v5, %v596_v8 }
 0x16c   : > { %v591_v12 = vadd.f32 %v590_v10, %v589_v7  ;;  %v599_v13 = vrot.slane %v598_v11, 4 }
 0x16e   : > { %v592_v15 = vrot.slane %v591_v12, 2  ;;  %v600_v17 = vadd.f32 %v599_v13, %v598_v11 }
 0x170   : > { %v593_v18 = vadd.f32 %v592_v15, %v591_v12  ;;  %v601_v21 = vrot.slane %v600_v17, 2  ;;  %v801_v15 = vld [vmem:[%s3244_s4 + $0x8] sm:$0xff] }
 0x172   : > { %v594_v22 = vrot.slane %v593_v18, 1  ;;  %v602_v24 = vadd.f32 %v601_v21, %v600_v17 }
 0x174   : > { %v603_v26 = vrot.slane %v602_v24, 1  ;;  %v595_v27 = vadd.f32 %v594_v22, %v593_v18  ;;  %v799_v18 = vld [vmem:[%s3243_s3 + $0x8] sm:$0xff] }
 0x176   : > { %v604_v28 = vadd.f32 %v603_v26, %v602_v24  ;;  %v805_v26 = vpop.permute.xlu0 %804 }
 0x178   : > { %v606_v30 = vsel %vm3265_vm6, %v595_v27, %v604_v28 }
 0x179   : > { %2160 = vmatmul.mubr.f32.vlgmr.msra.gmra.mxu1 %v606_v30 }
 0x17a   : > { %2219 = vmatpush3.msra.mxu1 %v2635_v9  ;;  %2220 = vmatprep.mubr.msk.f32.mxu1 %vm1105_vm14, %v1091_v29 }
 0x17d   : > { %2221 = vmatmul.mubr.msk.f32.vlgmr.msra.gmra.mxu1 %vm1105_vm14, %v1092_v31  ;;  %vm3263_vm14 = vcmask 31744  }
 0x239   : > { %v673_v36 = vpop.f32.mrf.mxu1 }
 0x23a   : > { %v677_v37 = vmul.f32 0.001953125, %v673_v36 }
 0x23b   : > { %v2161_v9 = vpop.f32.mrf.mxu1 }
 0x23c   : > { %v678_v39 = vmul.f32 %v677_v37, %v677_v37  ;;  %v686_v48 = vsub.f32 0.0, %v677_v37 }
 0x23e   : > { %v680_v40 = vrot.slane %v678_v39, 7 }
 0x240   : > { %v682_v42 = vsub.f32 %v677_v37, %v680_v40 }
 0x242   : > { %v683_v43 = vmax.f32 %v682_v42, 0.0 }
 0x244   : > { %v684_v45 = vadd.f32 1e-05, %v683_v43 }
 0x246   : > { %2386 = vrsqrt.f32 %v684_v45 }
 0x253   : > { %v2387_v46 = vpop.eup %2386 }
 0x254   : > { %v688_v49 = vrot.slane %v2387_v46, 1  ;;  %v694_v55 = vrot.slane %v2387_v46, %v2850_v51 }
 0x256   : > { %v690_v53 = vmul.f32 %v688_v49, %v686_v48 }
 0x258   : > { %v698_v54 = vrot.slane %v690_v53, %v2847_v50 }
 0x25a   : > { %v699_v57 = vsel %vm3265_vm6, %v694_v55, %v698_v54 }
 0x25b   : > { %2165 = vmatmul.mubr.msk.f32.vlgmr.msra.gmra.mxu0 %vm3263_vm14, %v699_v57  ;;  %vm3311_vm14 = vcmp.ge.s32.totalorder %v2633_v6, 4 }
 0x25c   : > { %2175 = vmatprep.mubr.msk.f32.mxu0 %vm3266_vm0, %v798_v62  ;;  %vm3312_vm15 = vmmov %vm3311_vm14 }
 0x25d   : > { %vm3313_vm6 = vmmov %vm3311_vm14 }
 0x25e   : > { %vm3314_vm0 = vmmov %vm3313_vm6 }
 0x31b   : > { %v774_v61 = vpop.f32.mrf.mxu0 }
 0x31c   : > { %v781_v0 = vrot.slane %v774_v61, %v2847_v50  ;;  %v787_v8 = vrot.slane %v774_v61, %v2850_v51 }
 0x31d   : > { %v2166_v1 = vpop.f32.mrf.mxu0 }
 0x31e   : > { %v782_v5 = vmul.f32 %v781_v0, %v581_v4  ;;  %v783_v7 = vmul.f32 %v781_v0, %v586_v63  ;;  %v1093_v63 = vld [vmem:[%s3246_s6] sm:$0xff] }
 0x320   : > { %v788_v10 = vadd.f32 %v787_v8, %v782_v5  ;;  %v789_v11 = vadd.f32 %v787_v8, %v783_v7 }
 0x322   : > { %v791_v12 = vmax.f32 %v789_v11, 0.0  ;;  %v790_v13 = vmax.f32 %v788_v10, 0.0 }
 0x324   : > { %794 = vrot.lane.b32.xlu1 %v791_v12, %s2491_s15  ;;  %2167 = vmatprep.subr.mxu0 %v791_v12 }
 0x325   : > { %2168 = vmatpush3.msra.mxu0 %v791_v12 }
 0x326   : > { %2169 = vmatprep.subr.mxu0 %v790_v13 }
 0x327   : > { %2170 = vmatpush3.msra.mxu0 %v790_v13 }
 0x328   : > { %792 = vrot.lane.b32.xlu1 %v790_v13, %s2491_s15  ;;  %s2424_s15 = sshll.u32 %s2495_s14, 4  ;;  %s2425_s15 = int_to_ptr.vmem [resolvable:$false] %s2424_s15 }
 0x329   : > { %s2426_s16 = scalar_lea.vmem %s2425_s15, 512  ;;  %p2427_p11 = scmp.lt.s32.totalorder %s3197_s24, %s2425_s15 }
 0x32a   : > { %p2428_p12 = scmp.lt.s32.totalorder %s2426_s16, %s2420_s12 }
 0x32c   : > { %809 = vperm.xlu1 %2385, %v801_v15   ;;  %p2429_p13 = por %p2428_p12, %p2427_p11 }
 0x32e   : > { %p2430_p0 = pnand %p2429_p13, %p2423_p10 }
 0x330   : > { %1097 = vperm.xlu1 %2385, %v1093_v63  }
 0x396   : > { %v795_v4 = vpop.permute.xlu1 %794 }
 0x397   : > { %2171 = vmatprep.subr.msk.mxu0 %vm3311_vm14, %v795_v4  ;;  %vm3319_vm14 = vnez %v3306_v58 }
 0x398   : > { %2172 = vmatpush3.msk.msra.mxu0 %vm3312_vm15, %v795_v4  ;;  %vm3316_vm15 = vmmov 0  }
 0x39a   : > { %v793_v17 = vpop.permute.xlu1 %792 }
 0x39b   : > { %2173 = vmatprep.subr.msk.mxu0 %vm3313_vm6, %v793_v17  ;;  %vm3317_vm6 = vnez %v3302_v52 }
 0x39c   : > { %2174 = vmatpush3.msk.msra.mxu0 %vm3314_vm0, %v793_v17  ;;  %vm3320_vm0 = vnez %v3308_v59 }
 0x39d   : > { %2176 = vmatmul.mubr.msk.f32.vlgmr.msra.gmra.mxu0 %vm3315_vm13, %v799_v18  ;;  %2178 = vmatprep.subr.mxu0 %v2490_v3  ;;  %vm3318_vm13 = vnez %v3304_v56  ;;  %v2222_v18 = vpop.f32.mrf.mxu1 }
 0x39e   : > { %2179 = vmatpush3.msk.msra.mxu0 %vm2649_vm1, %v2492_v19  ;;  %2210 = vmatprep.mubr.msk.f32.mxu0 %vm3316_vm15, %v2490_v3 }
 0x39f   : > { %2180 = vmatprep.subr.mxu0 %v2490_v3 }
 0x3a0   : > { %2181 = vmatpush3.msk.msra.mxu0 %vm2659_vm2, %v2492_v19 }
 0x3a1   : > { %2182 = vmatprep.subr.mxu0 %v2490_v3 }
 0x3a2   : > { %2183 = vmatpush3.msk.msra.mxu0 %vm2668_vm3, %v2492_v19 }
 0x3a3   : > { %2184 = vmatprep.subr.mxu0 %v2490_v3 }
 0x3a4   : > { %2185 = vmatpush3.msk.msra.mxu0 %vm2681_vm4, %v2492_v19 }
 0x3a5   : > { %2186 = vmatprep.subr.mxu0 %v2490_v3 }
 0x3a6   : > { %2187 = vmatpush3.msk.msra.mxu0 %vm2690_vm5, %v2492_v19 }
 0x3a7   : > { %2188 = vmatprep.subr.mxu0 %v2490_v3  ;;  %v810_v21 = vpop.permute.xlu1 %809 }
 0x3a8   : > { %2189 = vmatpush3.msk.msra.mxu0 %vm2718_vm7, %v2492_v19 }
 0x3a9   : > { %2190 = vmatprep.subr.mxu0 %v2490_v3 }
 0x3aa   : > { %2191 = vmatpush3.msk.msra.mxu0 %vm2728_vm8, %v2492_v19 }
 0x3ab   : > { %2192 = vmatprep.subr.mxu0 %v2490_v3 }
 0x3ac   : > { %2193 = vmatpush3.msk.msra.mxu0 %vm2738_vm9, %v2492_v19 }
 0x3ad   : > { %2194 = vmatprep.subr.mxu0 %v2490_v3 }
 0x3ae   : > { %2195 = vmatpush3.msk.msra.mxu0 %vm2748_vm10, %v2492_v19 }
 0x3af   : > { %2196 = vmatprep.subr.mxu0 %v2490_v3 }
 0x3b0   : > { %2197 = vmatpush3.msk.msra.mxu0 %vm2758_vm11, %v2492_v19 }
 0x3b1   : > { %2198 = vmatprep.subr.mxu0 %v2490_v3 }
 0x3b2   : > { %2199 = vmatpush3.msk.msra.mxu0 %vm2768_vm12, %v2492_v19 }
 0x3b3   : > { %2200 = vmatprep.subr.mxu0 %v2490_v3 }
 0x3b4   : > { %2201 = vmatpush3.msk.msra.mxu0 %vm3317_vm6, %v2492_v19  ;;  %vm3321_vm6 = vnez %v3310_v60 }
 0x3b5   : > { %2202 = vmatprep.subr.mxu0 %v2490_v3 }
 0x3b6   : > { %2203 = vmatpush3.msk.msra.mxu0 %vm3318_vm13, %v2492_v19 }
 0x3b7   : > { %2204 = vmatprep.subr.mxu0 %v2490_v3 }
 0x3b8   : > { %2205 = vmatpush3.msk.msra.mxu0 %vm3319_vm14, %v2492_v19 }
 0x3b9   : > { %2206 = vmatprep.subr.mxu0 %v2490_v3 }
 0x3ba   : > { %2207 = vmatpush3.msk.msra.mxu0 %vm3320_vm0, %v2492_v19  ;;  %vm3323_vm0 = vcmask 1043456  }
 0x3bb   : > { %2208 = vmatprep.subr.mxu0 %v2490_v3 }
 0x3bc   : > { %2209 = vmatpush3.msk.msra.mxu0 %vm3321_vm6, %v2492_v19  ;;  %vm3322_vm6 = vcmp.eq.s32.totalorder %v2625_v2, 0 }
 0x3bd   : > { %2213 = vmatprep.subr.mxu0 %v2490_v3 }
 0x45d   : > { %v2177_v22 = vpop.f32.mrf.mxu0 }
 0x45e   : > { %v2950_v24 = vadd.f32 %v2177_v22, %v810_v21 }
 0x45f   : > { %v885_v27 = vpop.f32.mrf.mxu0 }
 0x460   : > { %v2952_v28 = vadd.f32 %v885_v27, %v805_v26  ;;  %v902_v29 = vmul.f32 %v2950_v24, %v2950_v24 }
 0x462   : > { %v894_v30 = vadd.f32 %v2950_v24, %v2952_v28  ;;  %v901_v31 = vmul.f32 %v2952_v28, %v2952_v28 }
 0x464   : > { %v895_v33 = vrot.slane %v894_v30, 4  ;;  %v903_v36 = vadd.f32 %v902_v29, %v901_v31  ;;  %v1204_v29 = vld [vmem:[%s3247_s7] sm:$0xff]  ;;  %v1178_v31 = vpop.f32.mrf.mxu1 }
 0x466   : > { %v896_v37 = vadd.f32 %v895_v33, %v894_v30  ;;  %v904_v9 = vrot.slane %v903_v36, 4  ;;  %v1098_v30 = vpop.permute.xlu1 %1097 }
 0x468   : > { %v897_v39 = vrot.slane %v896_v37, 2  ;;  %v905_v40 = vadd.f32 %v904_v9, %v903_v36 }
 0x46a   : > { %v898_v42 = vadd.f32 %v897_v39, %v896_v37  ;;  %v906_v43 = vrot.slane %v905_v40, 2  ;;  %v1103_v37 = vpop.permute.xlu0 %1102  ;;  %v1179_v39 = vadd.f32 %v1178_v31, %v1098_v30 }
 0x46b   : > { %v1184_v9 = vadd.f32 %v2222_v18, %v1103_v37 }
 0x46c   : > { %v899_v45 = vrot.slane %v898_v42, 1  ;;  %v907_v46 = vadd.f32 %v906_v43, %v905_v40 }
 0x46e   : > { %v908_v48 = vrot.slane %v907_v46, 1  ;;  %v900_v49 = vadd.f32 %v899_v45, %v898_v42 }
 0x470   : > { %v909_v53 = vadd.f32 %v908_v48, %v907_v46  ;;  %v1206_v46 = vld [vmem:[%s3248_s8] sm:$0xff]  ;;  %v1207_v48 = vld [vmem:[%s3248_s8 + $0x8] sm:$0xff] }
 0x472   : > { %v910_v54 = vsel %vm3322_vm6, %v900_v49, %v909_v53 }
 0x473   : > { %2211 = vmatmul.mubr.f32.vlgmr.msra.gmra.mxu0 %v910_v54  ;;  %v1205_v54 = vld [vmem:[%s3247_s7 + $0x8] sm:$0xff] }
 0x474   : > { %2214 = vmatpush3.msk.msra.mxu0 %vm3323_vm0, %v2842_v34  ;;  %2215 = vmatprep.mubr.msk.f32.mxu0 %vm3316_vm15, %v2490_v3  ;;  %vm3324_vm0 = vcmask 31744  }
 0x475   : > { %2234 = vmatprep.subr.mxu0 %v2490_v3 }
 0x533   : > { %v977_v55 = vpop.f32.mrf.mxu0 }
 0x534   : > { %v981_v57 = vmul.f32 0.001953125, %v977_v55 }
 0x535   : > { %v2212_v61 = vpop.f32.mrf.mxu0 }
 0x536   : > { %v982_v62 = vmul.f32 %v981_v57, %v981_v57  ;;  %v990_v10 = vsub.f32 0.0, %v981_v57 }
 0x538   : > { %v984_v0 = vrot.slane %v982_v62, 7 }
 0x53a   : > { %v986_v1 = vsub.f32 %v981_v57, %v984_v0 }
 0x53c   : > { %v987_v5 = vmax.f32 %v986_v1, 0.0 }
 0x53e   : > { %v988_v7 = vadd.f32 1e-05, %v987_v5 }
 0x540   : > { %2388 = vrsqrt.f32 %v988_v7 }
 0x54d   : > { %v2389_v8 = vpop.eup %2388 }
 0x54e   : > { %v992_v11 = vrot.slane %v2389_v8, 1  ;;  %v998_v15 = vrot.slane %v2389_v8, %v2850_v51 }
 0x550   : > { %v994_v12 = vmul.f32 %v992_v11, %v990_v10 }
 0x552   : > { %v1002_v13 = vrot.slane %v994_v12, %v2847_v50 }
 0x554   : > { %v1003_v63 = vsel %vm3322_vm6, %v998_v15, %v1002_v13  ;;  %vm3325_vm6 = vnez %v3302_v52 }
 0x555   : > { %2216 = vmatmul.mubr.msk.f32.vlgmr.msra.gmra.mxu0 %vm3324_vm0, %v1003_v63  ;;  %vm3326_vm0 = vnez %v3308_v59 }
 0x556   : > { %2235 = vmatpush3.msk.msra.mxu0 %vm2649_vm1, %v2492_v19  ;;  %2266 = vmatprep.mubr.msk.f32.mxu0 %vm3316_vm15, %v2490_v3 }
 0x557   : > { %2236 = vmatprep.subr.mxu0 %v2490_v3 }
 0x558   : > { %2237 = vmatpush3.msk.msra.mxu0 %vm2659_vm2, %v2492_v19 }
 0x559   : > { %2238 = vmatprep.subr.mxu0 %v2490_v3 }
 0x55a   : > { %2239 = vmatpush3.msk.msra.mxu0 %vm2668_vm3, %v2492_v19 }
 0x55b   : > { %2240 = vmatprep.subr.mxu0 %v2490_v3 }
 0x55c   : > { %2241 = vmatpush3.msk.msra.mxu0 %vm2681_vm4, %v2492_v19 }
 0x55d   : > { %2242 = vmatprep.subr.mxu0 %v2490_v3 }
 0x55e   : > { %2243 = vmatpush3.msk.msra.mxu0 %vm2690_vm5, %v2492_v19 }
 0x55f   : > { %2244 = vmatprep.subr.mxu0 %v2490_v3 }
 0x560   : > { %2245 = vmatpush3.msk.msra.mxu0 %vm2718_vm7, %v2492_v19 }
 0x561   : > { %2246 = vmatprep.subr.mxu0 %v2490_v3 }
 0x562   : > { %2247 = vmatpush3.msk.msra.mxu0 %vm2728_vm8, %v2492_v19 }
 0x563   : > { %2248 = vmatprep.subr.mxu0 %v2490_v3 }
 0x564   : > { %2249 = vmatpush3.msk.msra.mxu0 %vm2738_vm9, %v2492_v19 }
 0x565   : > { %2250 = vmatprep.subr.mxu0 %v2490_v3 }
 0x566   : > { %2251 = vmatpush3.msk.msra.mxu0 %vm2748_vm10, %v2492_v19 }
 0x567   : > { %2252 = vmatprep.subr.mxu0 %v2490_v3 }
 0x568   : > { %2253 = vmatpush3.msk.msra.mxu0 %vm2758_vm11, %v2492_v19 }
 0x569   : > { %2254 = vmatprep.subr.mxu0 %v2490_v3 }
 0x56a   : > { %2255 = vmatpush3.msk.msra.mxu0 %vm2768_vm12, %v2492_v19  ;;  %vm3339_vm12 = vcmask 261120  }
 0x56b   : > { %2256 = vmatprep.subr.mxu0 %v2490_v3 }
 0x56c   : > { %2257 = vmatpush3.msk.msra.mxu0 %vm3325_vm6, %v2492_v19  ;;  %vm3327_vm6 = vnez %v3310_v60 }
 0x56d   : > { %2258 = vmatprep.subr.mxu0 %v2490_v3 }
 0x56e   : > { %2259 = vmatpush3.msk.msra.mxu0 %vm3318_vm13, %v2492_v19 }
 0x56f   : > { %2260 = vmatprep.subr.mxu0 %v2490_v3 }
 0x570   : > { %2261 = vmatpush3.msk.msra.mxu0 %vm3319_vm14, %v2492_v19  ;;  %vm3330_vm14 = vcmask 1043456  }
 0x571   : > { %2262 = vmatprep.subr.mxu0 %v2490_v3 }
 0x572   : > { %2263 = vmatpush3.msk.msra.mxu0 %vm3326_vm0, %v2492_v19  ;;  %vm3329_vm0 = vcmask 261120  }
 0x573   : > { %2264 = vmatprep.subr.mxu0 %v2490_v3 }
 0x574   : > { %2265 = vmatpush3.msk.msra.mxu0 %vm3327_vm6, %v2492_v19  ;;  %vm3328_vm6 = vcmask 261120  }
 0x575   : > { %2320 = vmatprep.subr.mxu0 %v2490_v3  ;;  %2231 = vmatprep.mubr.msk.f32.mxu1 %vm3328_vm6, %v1204_v29  ;;  %vm3270_vm6 = vcmp.ge.s32.totalorder %v2633_v6, 8 }
 0x615   : > { %v1073_v4 = vpop.f32.mrf.mxu0 }
 0x616   : > { %v1080_v17 = vrot.slane %v1073_v4, %v2847_v50  ;;  %v1086_v27 = vrot.slane %v1073_v4, %v2850_v51 }
 0x617   : > { %v2217_v21 = vpop.f32.mrf.mxu0 }
 0x618   : > { %v1081_v22 = vmul.f32 %v1080_v17, %v2952_v28  ;;  %v1082_v26 = vmul.f32 %v1080_v17, %v2950_v24 }
 0x61a   : > { %v1087_v33 = vadd.f32 %v1086_v27, %v1081_v22  ;;  %v1088_v36 = vadd.f32 %v1086_v27, %v1082_v26 }
 0x61c   : > { %v1089_v40 = vmax.f32 %v1087_v33, 0.0  ;;  %v1090_v42 = vmax.f32 %v1088_v36, 0.0 }
 0x61e   : > { %v1187_v28 = vadd.f32 %v1179_v39, %v1089_v40  ;;  %v1188_v43 = vadd.f32 %v1184_v9, %v1090_v42 }
 0x620   : > { %v3046_v24 = vmax.f32 %v1187_v28, 0.0  ;;  %v3048_v45 = vmax.f32 %v1188_v43, 0.0 }
 0x622   : > { %1197 = vrot.lane.b32.xlu0 %v3048_v45, %s3273_s30  ;;  %2223 = vmatprep.subr.mxu1 %v3048_v45 }
 0x623   : > { %1195 = vrot.lane.b32.xlu1 %v3046_v24, %s3273_s30  ;;  %2224 = vmatpush3.msra.mxu1 %v3048_v45 }
 0x624   : > { %2225 = vmatprep.subr.mxu1 %v3046_v24 }
 0x625   : > { %2226 = vmatpush3.msra.mxu1 %v3046_v24 }
 0x626   : > { %1210 = vperm.xlu0 %2384, %v1206_v46  }
 0x627   : > { %1215 = vperm.xlu1 %2385, %v1207_v48  }
 0x694   : > { %v1198_v49 = vpop.permute.xlu0 %1197 }
 0x695   : > { %2227 = vmatprep.subr.msk.mxu1 %vm3270_vm6, %v1198_v49  ;;  %v1196_v53 = vpop.permute.xlu1 %1195 }
 0x696   : > { %2228 = vmatpush3.msk.msra.mxu1 %vm3270_vm6, %v1198_v49 }
 0x697   : > { %2229 = vmatprep.subr.msk.mxu1 %vm3270_vm6, %v1196_v53 }
 0x698   : > { %2230 = vmatpush3.msk.msra.mxu1 %vm3270_vm6, %v1196_v53  ;;  %v1502_v53 = vld [vmem:[#allocation3] sm:$0xff]  ;;  %vm3334_vm6 = vcmask 261120  }
 0x699   : > { %2232 = vmatmul.mubr.msk.f32.vlgmr.msra.gmra.mxu1 %vm3329_vm0, %v1205_v54  ;;  %2269 = vmatprep.subr.mxu1 %v2490_v3  ;;  %vm3332_vm0 = vcmask 1043456  }
 0x69a   : > { %2270 = vmatpush3.msk.msra.mxu1 %vm3330_vm14, %v2842_v34  ;;  %2271 = vmatprep.mubr.msk.f32.mxu1 %vm3316_vm15, %v2490_v3  ;;  %vm3331_vm14 = vcmp.eq.s32.totalorder %v2625_v2, 0 }
 0x6a1   : > { %v1211_v62 = vpop.permute.xlu0 %1210 }
 0x6a2   : > { %v1216_v55 = vpop.permute.xlu1 %1215 }
 0x759   : > { %v2233_v57 = vpop.f32.mrf.mxu1 }
 0x75a   : > { %v1296_v61 = vadd.f32 %v2233_v57, %v1216_v55 }
 0x75b   : > { %v1290_v0 = vpop.f32.mrf.mxu1 }
 0x75c   : > { %v1291_v1 = vadd.f32 %v1290_v0, %v1211_v62  ;;  %v1307_v5 = vmul.f32 %v1296_v61, %v1296_v61 }
 0x75e   : > { %v1299_v7 = vadd.f32 %v1296_v61, %v1291_v1  ;;  %v1306_v8 = vmul.f32 %v1291_v1, %v1291_v1 }
 0x760   : > { %v1300_v10 = vrot.slane %v1299_v7, 4  ;;  %v1308_v11 = vadd.f32 %v1307_v5, %v1306_v8 }
 0x762   : > { %v1301_v12 = vadd.f32 %v1300_v10, %v1299_v7  ;;  %v1309_v13 = vrot.slane %v1308_v11, 4 }
 0x764   : > { %v1302_v15 = vrot.slane %v1301_v12, 2  ;;  %v1310_v63 = vadd.f32 %v1309_v13, %v1308_v11 }
 0x766   : > { %v1303_v4 = vadd.f32 %v1302_v15, %v1301_v12  ;;  %v1311_v17 = vrot.slane %v1310_v63, 2  ;;  %v1504_v12 = vld [vmem:[%s3250_s10] sm:$0xff]  ;;  %v1503_v15 = vld [vmem:[#allocation3 + $0x8] sm:$0xff] }
 0x768   : > { %v1304_v18 = vrot.slane %v1303_v4, 1  ;;  %v1312_v21 = vadd.f32 %v1311_v17, %v1310_v63 }
 0x76a   : > { %v1313_v22 = vrot.slane %v1312_v21, 1  ;;  %v1305_v26 = vadd.f32 %v1304_v18, %v1303_v4 }
 0x76c   : > { %v1314_v27 = vadd.f32 %v1313_v22, %v1312_v21 }
 0x76e   : > { %v1315_v29 = vsel %vm3331_vm14, %v1305_v26, %v1314_v27 }
 0x76f   : > { %2267 = vmatmul.mubr.f32.vlgmr.msra.gmra.mxu0 %v1315_v29 }
 0x770   : > { %2321 = vmatpush3.msk.msra.mxu0 %vm3332_vm0, %v2842_v34  ;;  %2322 = vmatprep.mubr.msk.f32.mxu0 %vm3316_vm15, %v2490_v3  ;;  %vm3333_vm0 = vcmask 31744  }
 0x82f   : > { %v1382_v30 = vpop.f32.mrf.mxu0 }
 0x830   : > { %v1386_v31 = vmul.f32 0.001953125, %v1382_v30 }
 0x831   : > { %v2268_v33 = vpop.f32.mrf.mxu0 }
 0x832   : > { %v1387_v36 = vmul.f32 %v1386_v31, %v1386_v31  ;;  %v1395_v28 = vsub.f32 0.0, %v1386_v31 }
 0x834   : > { %v1389_v37 = vrot.slane %v1387_v36, 7 }
 0x836   : > { %v1391_v9 = vsub.f32 %v1386_v31, %v1389_v37 }
 0x838   : > { %v1392_v39 = vmax.f32 %v1391_v9, 0.0 }
 0x83a   : > { %v1393_v40 = vadd.f32 1e-05, %v1392_v39 }
 0x83c   : > { %2390 = vrsqrt.f32 %v1393_v40 }
 0x849   : > { %v2391_v42 = vpop.eup %2390 }
 0x84a   : > { %v1397_v43 = vrot.slane %v2391_v42, 1  ;;  %v1403_v34 = vrot.slane %v2391_v42, %v2850_v51 }
 0x84c   : > { %v1399_v46 = vmul.f32 %v1397_v43, %v1395_v28 }
 0x84e   : > { %v1407_v48 = vrot.slane %v1399_v46, %v2847_v50 }
 0x850   : > { %v1408_v49 = vsel %vm3331_vm14, %v1403_v34, %v1407_v48 }
 0x851   : > { %2272 = vmatmul.mubr.msk.f32.vlgmr.msra.gmra.mxu1 %vm3333_vm0, %v1408_v49 }
 0x852   : > { %2282 = vmatprep.mubr.msk.f32.mxu1 %vm3334_vm6, %v1502_v53  ;;  %vm3335_vm6 = vcmp.ge.s32.totalorder %v2633_v6, 8 }
 0x853   : > { %vm3336_vm14 = vmmov %vm3335_vm6 }
 0x854   : > { %vm3337_vm0 = vmmov %vm3335_vm6 }
 0x855   : > { %vm3338_vm13 = vmmov %vm3337_vm0 }
 0x911   : > { %v1478_v54 = vpop.f32.mrf.mxu1 }
 0x912   : > { %v1485_v55 = vrot.slane %v1478_v54, %v2847_v50  ;;  %v1491_v5 = vrot.slane %v1478_v54, %v2850_v51 }
 0x913   : > { %v2273_v57 = vpop.f32.mrf.mxu1 }
 0x914   : > { %v1486_v62 = vmul.f32 %v1485_v55, %v1291_v1  ;;  %v1487_v0 = vmul.f32 %v1485_v55, %v1296_v61  ;;  %v1505_v61 = vld [vmem:[%s3250_s10 + $0x8] sm:$0xff] }
 0x916   : > { %v1492_v7 = vadd.f32 %v1491_v5, %v1486_v62  ;;  %v1493_v8 = vadd.f32 %v1491_v5, %v1487_v0 }
 0x918   : > { %v1495_v10 = vmax.f32 %v1493_v8, 0.0  ;;  %v1494_v11 = vmax.f32 %v1492_v7, 0.0 }
 0x91a   : > { %1498 = vrot.lane.b32.xlu0 %v1495_v10, %s3273_s30  ;;  %2274 = vmatprep.subr.mxu1 %v1495_v10 }
 0x91b   : > { %1496 = vrot.lane.b32.xlu1 %v1494_v11, %s3273_s30  ;;  %2275 = vmatpush3.msra.mxu1 %v1495_v10 }
 0x91c   : > { %2276 = vmatprep.subr.mxu1 %v1494_v11 }
 0x91d   : > { %2277 = vmatpush3.msra.mxu1 %v1494_v11 }
 0x91e   : > { %1508 = vperm.xlu0 %2384, %v1504_v12  }
 0x91f   : > { %1513 = vperm.xlu1 %2385, %v1505_v61  }
 0x98c   : > { %v1499_v1 = vpop.permute.xlu0 %1498 }
 0x98d   : > { %2278 = vmatprep.subr.msk.mxu1 %vm3335_vm6, %v1499_v1  ;;  %v1497_v13 = vpop.permute.xlu1 %1496 }
 0x98e   : > { %2279 = vmatpush3.msk.msra.mxu1 %vm3336_vm14, %v1499_v1 }
 0x98f   : > { %2280 = vmatprep.subr.msk.mxu1 %vm3337_vm0, %v1497_v13 }
 0x990   : > { %2281 = vmatpush3.msk.msra.mxu1 %vm3338_vm13, %v1497_v13 }
 0x991   : > { %2283 = vmatmul.mubr.msk.f32.vlgmr.msra.gmra.mxu1 %vm3339_vm12, %v1503_v15  ;;  %2285 = vmatprep.subr.mxu1 %v2490_v3 }
 0x992   : > { %2286 = vmatpush3.msk.msra.mxu1 %vm2649_vm1, %v2492_v19  ;;  %2317 = vmatprep.mubr.msk.f32.mxu1 %vm3316_vm15, %v2490_v3  ;;  %vm3340_vm1 = vnez %v3300_v47 }
 0x993   : > { %2287 = vmatprep.subr.mxu1 %v2490_v3 }
 0x994   : > { %2288 = vmatpush3.msk.msra.mxu1 %vm2659_vm2, %v2492_v19  ;;  %vm3341_vm2 = vnez %v3302_v52 }
 0x995   : > { %2289 = vmatprep.subr.mxu1 %v2490_v3 }
 0x996   : > { %2290 = vmatpush3.msk.msra.mxu1 %vm2668_vm3, %v2492_v19  ;;  %vm3342_vm3 = vnez %v3304_v56 }
 0x997   : > { %2291 = vmatprep.subr.mxu1 %v2490_v3 }
 0x998   : > { %2292 = vmatpush3.msk.msra.mxu1 %vm2681_vm4, %v2492_v19  ;;  %vm3343_vm4 = vnez %v3306_v58 }
 0x999   : > { %2293 = vmatprep.subr.mxu1 %v2490_v3  ;;  %v1509_v20 = vpop.permute.xlu0 %1508 }
 0x99a   : > { %2294 = vmatpush3.msk.msra.mxu1 %vm2690_vm5, %v2492_v19  ;;  %vm3344_vm5 = vnez %v3308_v59  ;;  %v1514_v6 = vpop.permute.xlu1 %1513 }
 0x99b   : > { %2295 = vmatprep.subr.mxu1 %v2490_v3 }
 0x99c   : > { %2296 = vmatpush3.msk.msra.mxu1 %vm2718_vm7, %v2492_v19  ;;  %vm3345_vm7 = vnez %v3310_v60 }
 0x99d   : > { %2297 = vmatprep.subr.mxu1 %v2490_v3 }
 0x99e   : > { %2298 = vmatpush3.msk.msra.mxu1 %vm2728_vm8, %v2492_v19  ;;  %vm3346_vm8 = vcmp.eq.s32.totalorder %v2625_v2, 0 }
 0x99f   : > { %2299 = vmatprep.subr.mxu1 %v2490_v3 }
 0x9a0   : > { %2300 = vmatpush3.msk.msra.mxu1 %vm2738_vm9, %v2492_v19  ;;  %vm3347_vm9 = vmmov %vm3346_vm8 }
 0x9a1   : > { %2301 = vmatprep.subr.mxu1 %v2490_v3 }
 0x9a2   : > { %2302 = vmatpush3.msk.msra.mxu1 %vm2748_vm10, %v2492_v19  ;;  %vm3348_vm10 = vcmask 31744  }
 0x9a3   : > { %2303 = vmatprep.subr.mxu1 %v2490_v3 }
 0x9a4   : > { %2304 = vmatpush3.msk.msra.mxu1 %vm2758_vm11, %v2492_v19 }
 0x9a5   : > { %2305 = vmatprep.subr.mxu1 %v2490_v3 }
 0x9a6   : > { %2306 = vmatpush3.msk.msra.mxu1 %vm3340_vm1, %v2492_v19 }
 0x9a7   : > { %2307 = vmatprep.subr.mxu1 %v2490_v3 }
 0x9a8   : > { %2308 = vmatpush3.msk.msra.mxu1 %vm3341_vm2, %v2492_v19 }
 0x9a9   : > { %2309 = vmatprep.subr.mxu1 %v2490_v3 }
 0x9aa   : > { %2310 = vmatpush3.msk.msra.mxu1 %vm3342_vm3, %v2492_v19 }
 0x9ab   : > { %2311 = vmatprep.subr.mxu1 %v2490_v3 }
 0x9ac   : > { %2312 = vmatpush3.msk.msra.mxu1 %vm3343_vm4, %v2492_v19 }
 0x9ad   : > { %2313 = vmatprep.subr.mxu1 %v2490_v3 }
 0x9ae   : > { %2314 = vmatpush3.msk.msra.mxu1 %vm3344_vm5, %v2492_v19 }
 0x9af   : > { %2315 = vmatprep.subr.mxu1 %v2490_v3 }
 0x9b0   : > { %2316 = vmatpush3.msk.msra.mxu1 %vm3345_vm7, %v2492_v19 }
 0xa51   : > { %v2284_v14 = vpop.f32.mrf.mxu1 }
 0xa52   : > { %v1594_v16 = vadd.f32 %v2284_v14, %v1514_v6 }
 0xa53   : > { %v1588_v23 = vpop.f32.mrf.mxu1 }
 0xa54   : > { %v1589_v25 = vadd.f32 %v1588_v23, %v1509_v20  ;;  %v1605_v32 = vmul.f32 %v1594_v16, %v1594_v16 }
 0xa56   : > { %v1597_v35 = vadd.f32 %v1594_v16, %v1589_v25  ;;  %v1604_v38 = vmul.f32 %v1589_v25, %v1589_v25 }
 0xa58   : > { %v1598_v41 = vrot.slane %v1597_v35, 4  ;;  %v1606_v44 = vadd.f32 %v1605_v32, %v1604_v38 }
 0xa5a   : > { %v1599_v47 = vadd.f32 %v1598_v41, %v1597_v35  ;;  %v1607_v52 = vrot.slane %v1606_v44, 4 }
 0xa5c   : > { %v1600_v56 = vrot.slane %v1599_v47, 2  ;;  %v1608_v58 = vadd.f32 %v1607_v52, %v1606_v44 }
 0xa5e   : > { %v1601_v3 = vadd.f32 %v1600_v56, %v1599_v47  ;;  %v1609_v59 = vrot.slane %v1608_v58, 2 }
 0xa60   : > { %v1602_v63 = vrot.slane %v1601_v3, 1  ;;  %v1610_v60 = vadd.f32 %v1609_v59, %v1608_v58 }
 0xa62   : > { %v1611_v19 = vrot.slane %v1610_v60, 1  ;;  %v1603_v4 = vadd.f32 %v1602_v63, %v1601_v3 }
 0xa64   : > { %v1612_v17 = vadd.f32 %v1611_v19, %v1610_v60 }
 0xa66   : > { %v1613_v18 = vsel %vm3346_vm8, %v1603_v4, %v1612_v17 }
 0xa67   : > { %2318 = vmatmul.mubr.f32.vlgmr.msra.gmra.mxu1 %v1613_v18 }
 0xb27   : > { %v1680_v21 = vpop.f32.mrf.mxu1 }
 0xb28   : > { %v1684_v22 = vmul.f32 0.001953125, %v1680_v21 }
 0xb29   : > { %v2319_v26 = vpop.f32.mrf.mxu1 }
 0xb2a   : > { %v1685_v27 = vmul.f32 %v1684_v22, %v1684_v22  ;;  %v1693_v37 = vsub.f32 0.0, %v1684_v22 }
 0xb2c   : > { %v1687_v29 = vrot.slane %v1685_v27, 7 }
 0xb2e   : > { %v1689_v30 = vsub.f32 %v1684_v22, %v1687_v29 }
 0xb30   : > { %v1690_v31 = vmax.f32 %v1689_v30, 0.0 }
 0xb32   : > { %v1691_v33 = vadd.f32 1e-05, %v1690_v31 }
 0xb34   : > { %2392 = vrsqrt.f32 %v1691_v33 }
 0xb41   : > { %v2393_v36 = vpop.eup %2392 }
 0xb42   : > { %v1695_v9 = vrot.slane %v2393_v36, 1  ;;  %v1701_v42 = vrot.slane %v2393_v36, %v2850_v51 }
 0xb44   : > { %v1697_v39 = vmul.f32 %v1695_v9, %v1693_v37 }
 0xb46   : > { %v1705_v40 = vrot.slane %v1697_v39, %v2847_v50 }
 0xb48   : > { %v1706_v28 = vsel %vm3347_vm9, %v1701_v42, %v1705_v40 }
 0xb49   : > { %2323 = vmatmul.mubr.msk.f32.vlgmr.msra.gmra.mxu0 %vm3348_vm10, %v1706_v28 }
 0xc09   : > { %v1776_v43 = vpop.f32.mrf.mxu0 }
 0xc0a   : > { %v1783_v46 = vrot.slane %v1776_v43, %v2847_v50  ;;  %v1789_v53 = vrot.slane %v1776_v43, %v2850_v51 }
 0xc0b   : > { %v2324_v48 = vpop.f32.mrf.mxu0 }
 0xc0c   : > { %v1784_v34 = vmul.f32 %v1783_v46, %v1589_v25  ;;  %v1785_v49 = vmul.f32 %v1783_v46, %v1594_v16 }
 0xc0e   : > { %v1790_v54 = vadd.f32 %v1789_v53, %v1784_v34  ;;  %v1791_v55 = vadd.f32 %v1789_v53, %v1785_v49 }
 0xc10   : > { %v1792_v57 = vmax.f32 %v1790_v54, 0.0  ;;  %v1793_v62 = vmax.f32 %v1791_v55, 0.0 }
 0xc12   : > { %v1794_v2 = vadd.f32 %v1792_v57, %v3046_v24  ;;  %v1795_v0 = vadd.f32 %v1793_v62, %v3048_v45 }
 0xc14   : > { %v1796_v50 = vmax.f32 %v1794_v2, 0.0  ;;  %v1797_v5 = vmax.f32 %v1795_v0, 0.0 }
 0xc16   : > { %1800 = vst [vmem:[%s392_s22] sm:$0xff] %v1796_v50  ;;  %1801 = vst [vmem:[%s392_s22 + $0x8] sm:$0xff] %v1797_v5 }
 0xc17   : > { %2433 = shalt.err (!%p2430_p0)
}
 0xc18   : > { %s2434_s13 = scalar_lea.hbm %s3195_s29, 256  ;;  %s2438_s14 = scalar_lea.hbm %s3251_s11, 2048 }
 0xc19   : > { %p2435_p1 = scmp.ne.s32.totalorder %s3195_s29, %s2434_s13  ;;  %p2439_p4 = scmp.lt.s32.totalorder %s3195_s29, %s3251_s11 }
 0xc1a   : > { %p2440_p7 = scmp.lt.s32.totalorder %s2438_s14, %s2434_s13 }
 0xc1b   : > { %p2436_p2 = pnand %p2435_p1, %p2595_p5 }
 0xc1c   : > { %p2441_p8 = por %p2440_p7, %p2439_p4 }
 0xc1d   : > { %p2437_p3 = pneg %p2436_p2 }
 0xc1f   : > { %p2442_p6 = pnand %p2441_p8, %p2437_p3 }
 0xc21   : > { %2445 = shalt.err (!%p2442_p6)
}
 0xc22   : > { %s2496_s12 = smov 128   ;;  %s3349_s15 = smov 8  }
 0xc23   : > { %2329 = dma.vmem_to_hbm [thread:$0]  (%p2595_p5), %s3197_s24, 256, %s3195_s29, %s3199_s21, %s2496_s12, %s2496_s12, %s3349_s15  }
 0xc24 PF: > { %p2341_p9 = scmp.ge.s32.totalorder %s2484_s20, 2  ;;  %s1831_s16 = sand.u32 1, %s2472_s17  }
 0xc25   : > { %p3350_p10 = scmp.ne.s32.totalorder %s3276_s28, 0  ;;  %s1832_s0 = scalar_lea.sflag [#allocation5], %s1831_s16 }
 0xc27   : > { %p2336_p11 = pnand %p2341_p9, %p3350_p10 }
 0xc29   : > { %p2337_p12 = pneg %p2336_p11 }
 0xc2b   : > { %2467 = dma.done.wait (%p2337_p12), %s1832_s0, 256  }
 0xc2c   : > { %2469 = vsyncadd (%p2337_p12), %s1832_s0, 4294967040  ;;  %p22_p13 = scmp.ge.s32.totalorder %s2582_s23, 10   ;;  %s3351_s17 = smov %s2476_s18 }
 0xc2d   : > { %s3352_s18 = smov %s2480_s19  ;;  %s3353_s19 = smov %s2593_s26 }
 0xc2e   : > { %s3354_s20 = smov %s2582_s23  ;;  %24 = sbr.rel (!%p22_p13) target bundleno = 6 (0x6), region = 104 }
 0xc33   :  { %1837 = vsyncpa [#allocation4], 1 }
 0xc34   :  { %1839 = vsyncpa [#allocation4 + $0x1], 1 }
 0xc35   :  { %1840 = vsyncpa [#allocation5], 1 }
 0xc36   :  { %1842 = vsyncpa [#allocation5 + $0x1], 1 }

</bundles_post_ra>
